<compile_context>
chip_gen: v5e
topology: v5e:2x2
jax: 0.10.0
libtpu: 0.0.40
codegen_flags: <defaults>
</compile_context>

<pallas_src>
import functools
import math

import jax
import jax.numpy as jnp
import numpy as np
from jax.experimental import pallas as pl
from jax.experimental.pallas import tpu as pltpu


def _round_up(x, m):
    return ((x + m - 1) // m) * m


def _masked_layer_norm(x, gamma, beta, n_valid, eps=1e-5):
    """LayerNorm over the last (possibly zero-padded) dim.

    Only the first `n_valid` columns are real; the padded columns of `x` are
    guaranteed to be zero and gamma/beta are zero there, so the statistics are
    exact and the padded lanes stay exactly zero.
    """
    mean = jnp.sum(x, axis=-1, keepdims=True) / n_valid
    var = jnp.sum(x * x, axis=-1, keepdims=True) / n_valid - mean * mean
    var = jnp.maximum(var, 0.0)
    return (x - mean) * jax.lax.rsqrt(var + eps) * gamma + beta


def encoder_layer_kernel(num_heads, d_model, seq_len, q_tile,
                         xq_ref, xkv_ref,
                         wq_ref, bq_ref, wk_ref, bk_ref, wv_ref, bv_ref,
                         wo_ref, bo_ref,
                         w1_ref, b1_ref, w2_ref, b2_ref,
                         g1_ref, be1_ref, g2_ref, be2_ref,
                         o_ref):
    d_k = d_model // num_heads
    scale = 1.0 / math.sqrt(d_k)
    bf16 = jnp.bfloat16

    x_rows = xq_ref[...]                     # (TQ, D_pad) f32 — query rows + residual
    x_full = xkv_ref[...]                    # (S,  D_pad) f32 — full sequence for K/V

    xr_bf = x_rows.astype(bf16)
    xf_bf = x_full.astype(bf16)

    # ---- Q/K/V projections: bf16 MXU inputs, f32 accumulation -------------
    q = jnp.dot(xr_bf, wq_ref[...], preferred_element_type=jnp.float32) + bq_ref[...]
    k = jnp.dot(xf_bf, wk_ref[...], preferred_element_type=jnp.float32) + bk_ref[...]
    v = jnp.dot(xf_bf, wv_ref[...], preferred_element_type=jnp.float32) + bv_ref[...]

    # ---- multi-head attention: all heads batched in single einsums --------
    qh = jnp.transpose(q.reshape(q_tile, num_heads, d_k), (1, 0, 2)).astype(bf16)   # (H,TQ,dk)
    kh = jnp.transpose(k.reshape(seq_len, num_heads, d_k), (1, 0, 2)).astype(bf16)  # (H,S,dk)
    vh = jnp.transpose(v.reshape(seq_len, num_heads, d_k), (1, 0, 2)).astype(bf16)  # (H,S,dk)

    scores = jnp.einsum('hqd,hkd->hqk', qh, kh,
                        preferred_element_type=jnp.float32) * scale                 # (H,TQ,S)
    scores = scores - jnp.max(scores, axis=-1, keepdims=True)
    e = jnp.exp(scores)
    denom = jnp.sum(e, axis=-1, keepdims=True)
    p = e * pl.reciprocal(denom, approx=True)                                       # softmax (f32)

    ctx = jnp.einsum('hqk,hkd->hqd', p.astype(bf16), vh,
                     preferred_element_type=jnp.float32)                            # (H,TQ,dk)
    attn = jnp.transpose(ctx, (1, 0, 2)).reshape(q_tile, d_model).astype(bf16)      # (TQ,D)
    attn_out = jnp.dot(attn, wo_ref[...],
                       preferred_element_type=jnp.float32) + bo_ref[...]            # (TQ,D_pad)

    # ---- residual + LayerNorm 1 (f32) --------------------------------------
    x1 = _masked_layer_norm(x_rows + attn_out, g1_ref[...], be1_ref[...], d_model)

    # ---- feed-forward: Linear -> ReLU -> Linear -----------------------------
    h1 = jnp.dot(x1.astype(bf16), w1_ref[...],
                 preferred_element_type=jnp.float32) + b1_ref[...]
    h1 = jnp.maximum(h1, 0.0)
    ff = jnp.dot(h1.astype(bf16), w2_ref[...],
                 preferred_element_type=jnp.float32) + b2_ref[...]

    # ---- residual + LayerNorm 2 (f32) --------------------------------------
    x2 = _masked_layer_norm(x1 + ff, g2_ref[...], be2_ref[...], d_model)
    o_ref[...] = x2.astype(o_ref.dtype)


def _prepare_params(params, d_model, d_pad, f_pad):
    """Zero-pad weights to lane-dense shapes; weights bf16, bias/gamma/beta f32."""
    def pad2(a, rows, cols, dtype):
        a = jnp.asarray(a, jnp.float32)
        a = jnp.pad(a, ((0, rows - a.shape[0]), (0, cols - a.shape[1])))
        return a.astype(dtype)

    bf16, f32 = jnp.bfloat16, jnp.float32
    return [
        pad2(params['wq'], d_pad, d_model, bf16), pad2(params['bq'], 1, d_model, f32),
        pad2(params['wk'], d_pad, d_model, bf16), pad2(params['bk'], 1, d_model, f32),
        pad2(params['wv'], d_pad, d_model, bf16), pad2(params['bv'], 1, d_model, f32),
        pad2(params['wo'], d_model, d_pad, bf16), pad2(params['bo'], 1, d_pad, f32),
        pad2(params['w1'], d_pad, f_pad, bf16),   pad2(params['b1'], 1, f_pad, f32),
        pad2(params['w2'], f_pad, d_pad, bf16),   pad2(params['b2'], 1, d_pad, f32),
        pad2(params['g1'], 1, d_pad, f32),        pad2(params['be1'], 1, d_pad, f32),
        pad2(params['g2'], 1, d_pad, f32),        pad2(params['be2'], 1, d_pad, f32),
    ]


def encoder_layer_pallas(x, params, num_heads, q_tile=None):
    B, S, D = x.shape
    d_ff = params['w1'].shape[1]
    assert D % num_heads == 0, "d_model must be divisible by num_heads"

    d_pad = _round_up(D, 128)
    f_pad = _round_up(d_ff, 128)

    if q_tile is None:
        q_tile = S if S <= 128 else 128
    q_tile = min(q_tile, S)
    assert S % q_tile == 0, "S must be divisible by q_tile"
    if q_tile != S:
        assert q_tile % 8 == 0, "q_tile must be a multiple of 8 sublanes"
    n_q = S // q_tile

    x_pad = jnp.pad(x.astype(jnp.float32), ((0, 0), (0, 0), (0, d_pad - D)))
    args = _prepare_params(params, D, d_pad, f_pad)

    def const_spec(a):
        # Weight / bias block that stays resident across the whole grid.
        return pl.BlockSpec(a.shape, lambda b, qi: (0, 0))

    in_specs = (
        [pl.BlockSpec((None, q_tile, d_pad), lambda b, qi: (b, qi, 0)),  # query rows
         pl.BlockSpec((None, S, d_pad), lambda b, qi: (b, 0, 0))]        # full seq (K/V)
        + [const_spec(a) for a in args]
    )
    out_spec = pl.BlockSpec((None, q_tile, d_pad), lambda b, qi: (b, qi, 0))

    kernel = functools.partial(encoder_layer_kernel, num_heads, D, S, q_tile)

    out = pl.pallas_call(
        kernel,
        out_shape=jax.ShapeDtypeStruct((B, S, d_pad), jnp.float32),
        grid_spec=pltpu.PrefetchScalarGridSpec(
            num_scalar_prefetch=0,
            grid=(B, n_q),
            in_specs=in_specs,
            out_specs=out_spec,
        ),
        compiler_params=pltpu.CompilerParams(
            dimension_semantics=("parallel", "parallel"),
            vmem_limit_bytes=32 * 1024 * 1024,
        ),
    )(x_pad, x_pad, *args)

    return out[:, :, :D]


# ----------------------- pure-JAX f32 reference (for validation) -------------
def encoder_layer_ref(x, p, num_heads):
    B, S, D = x.shape
    d_k = D // num_heads

    def linear(z, w, b):
        return z @ w + b

    q = linear(x, p['wq'], p['bq']).reshape(B, S, num_heads, d_k).transpose(0, 2, 1, 3)
    k = linear(x, p['wk'], p['bk']).reshape(B, S, num_heads, d_k).transpose(0, 2, 1, 3)
    v = linear(x, p['wv'], p['bv']).reshape(B, S, num_heads, d_k).transpose(0, 2, 1, 3)
    scores = jnp.einsum('bhqd,bhkd->bhqk', q, k) / jnp.sqrt(jnp.float32(d_k))
    attn = jax.nn.softmax(scores, axis=-1)
    out = jnp.einsum('bhqk,bhkd->bhqd', attn, v).transpose(0, 2, 1, 3).reshape(B, S, D)
    out = linear(out, p['wo'], p['bo'])

    def ln(z, g, b, eps=1e-5):
        m = jnp.mean(z, axis=-1, keepdims=True)
        var = jnp.mean((z - m) ** 2, axis=-1, keepdims=True)
        return (z - m) * jax.lax.rsqrt(var + eps) * g + b

    x1 = ln(x + out, p['g1'], p['be1'])
    ff = linear(jnp.maximum(linear(x1, p['w1'], p['b1']), 0.0), p['w2'], p['b2'])
    return ln(x1 + ff, p['g2'], p['be2'])


# --------------------------------- main --------------------------------------
if __name__ == "__main__":
    # batch=4, seq=16, d_model=64, heads=4, d_ff=256; q_tile=8 -> grid (4, 2) = 8 steps
    B, S, D, H, DFF = 4, 16, 64, 4, 256

    key = jax.random.PRNGKey(0)
    keys = jax.random.split(key, 17)

    def winit(k, shape):
        return jax.random.normal(k, shape, dtype=jnp.float32) * 0.05

    params = {
        'wq': winit(keys[0], (D, D)),    'bq': winit(keys[1], (1, D)),
        'wk': winit(keys[2], (D, D)),    'bk': winit(keys[3], (1, D)),
        'wv': winit(keys[4], (D, D)),    'bv': winit(keys[5], (1, D)),
        'wo': winit(keys[6], (D, D)),    'bo': winit(keys[7], (1, D)),
        'w1': winit(keys[8], (D, DFF)),  'b1': winit(keys[9], (1, DFF)),
        'w2': winit(keys[10], (DFF, D)), 'b2': winit(keys[11], (1, D)),
        'g1': jnp.ones((1, D), jnp.float32),  'be1': jnp.zeros((1, D), jnp.float32),
        'g2': jnp.ones((1, D), jnp.float32),  'be2': jnp.zeros((1, D), jnp.float32),
    }

    x = jax.random.normal(keys[16], (B, S, D), dtype=jnp.float32)

    out = jax.block_until_ready(encoder_layer_pallas(x, params, H, q_tile=8))
    ref = encoder_layer_ref(x, params, H)

    # bf16 MXU inputs (f32 accumulation) => compare against f32 ref with bf16-level tolerance.
    np.testing.assert_allclose(np.asarray(out), np.asarray(ref), atol=2e-2, rtol=2e-2)

    print("KERNEL_OK")
</pallas_src>

<mosaic_0001>
module attributes {stable_mosaic.version = 11 : i64} {
  func.func @encoder_layer_kernel(%arg0: i32, %arg1: i32, %arg2: memref<1x8x128xf32, #tpu.memory_space<vmem>>, %arg3: memref<1x16x128xf32, #tpu.memory_space<vmem>>, %arg4: memref<128x64xbf16, #tpu.memory_space<vmem>>, %arg5: memref<1x64xf32, #tpu.memory_space<vmem>>, %arg6: memref<128x64xbf16, #tpu.memory_space<vmem>>, %arg7: memref<1x64xf32, #tpu.memory_space<vmem>>, %arg8: memref<128x64xbf16, #tpu.memory_space<vmem>>, %arg9: memref<1x64xf32, #tpu.memory_space<vmem>>, %arg10: memref<64x128xbf16, #tpu.memory_space<vmem>>, %arg11: memref<1x128xf32, #tpu.memory_space<vmem>>, %arg12: memref<128x256xbf16, #tpu.memory_space<vmem>>, %arg13: memref<1x256xf32, #tpu.memory_space<vmem>>, %arg14: memref<256x128xbf16, #tpu.memory_space<vmem>>, %arg15: memref<1x128xf32, #tpu.memory_space<vmem>>, %arg16: memref<1x128xf32, #tpu.memory_space<vmem>>, %arg17: memref<1x128xf32, #tpu.memory_space<vmem>>, %arg18: memref<1x128xf32, #tpu.memory_space<vmem>>, %arg19: memref<1x128xf32, #tpu.memory_space<vmem>>, %arg20: memref<1x8x128xf32, #tpu.memory_space<vmem>>) attributes {dimension_semantics = [#tpu.dimension_semantics<parallel>, #tpu.dimension_semantics<parallel>], iteration_bounds = array<i64: 4, 2>, scalar_prefetch = 0 : i64, scratch_operands = 0 : i64, tpu.core_type = #tpu.core_type<tc>, window_params = [{transform_indices = @transform_0, window_bounds = array<i64: 1, 8, 128>}, {transform_indices = @transform_1, window_bounds = array<i64: 1, 16, 128>}, {pipeline_mode = #tpu.pipeline_mode<synchronous>, transform_indices = @transform_2, window_bounds = array<i64: 128, 64>}, {pipeline_mode = #tpu.pipeline_mode<synchronous>, transform_indices = @transform_3, window_bounds = array<i64: 1, 64>}, {pipeline_mode = #tpu.pipeline_mode<synchronous>, transform_indices = @transform_4, window_bounds = array<i64: 128, 64>}, {pipeline_mode = #tpu.pipeline_mode<synchronous>, transform_indices = @transform_5, window_bounds = array<i64: 1, 64>}, {pipeline_mode = #tpu.pipeline_mode<synchronous>, transform_indices = @transform_6, window_bounds = array<i64: 128, 64>}, {pipeline_mode = #tpu.pipeline_mode<synchronous>, transform_indices = @transform_7, window_bounds = array<i64: 1, 64>}, {pipeline_mode = #tpu.pipeline_mode<synchronous>, transform_indices = @transform_8, window_bounds = array<i64: 64, 128>}, {pipeline_mode = #tpu.pipeline_mode<synchronous>, transform_indices = @transform_9, window_bounds = array<i64: 1, 128>}, {pipeline_mode = #tpu.pipeline_mode<synchronous>, transform_indices = @transform_10, window_bounds = array<i64: 128, 256>}, {pipeline_mode = #tpu.pipeline_mode<synchronous>, transform_indices = @transform_11, window_bounds = array<i64: 1, 256>}, {pipeline_mode = #tpu.pipeline_mode<synchronous>, transform_indices = @transform_12, window_bounds = array<i64: 256, 128>}, {pipeline_mode = #tpu.pipeline_mode<synchronous>, transform_indices = @transform_13, window_bounds = array<i64: 1, 128>}, {pipeline_mode = #tpu.pipeline_mode<synchronous>, transform_indices = @transform_14, window_bounds = array<i64: 1, 128>}, {pipeline_mode = #tpu.pipeline_mode<synchronous>, transform_indices = @transform_15, window_bounds = array<i64: 1, 128>}, {pipeline_mode = #tpu.pipeline_mode<synchronous>, transform_indices = @transform_16, window_bounds = array<i64: 1, 128>}, {pipeline_mode = #tpu.pipeline_mode<synchronous>, transform_indices = @transform_17, window_bounds = array<i64: 1, 128>}, {transform_indices = @transform_18, window_bounds = array<i64: 1, 8, 128>}]} {
    %c0 = arith.constant 0 : index
    %c0_0 = arith.constant 0 : index
    %c0_1 = arith.constant 0 : index
    %0 = vector.load %arg2[%c0, %c0_0, %c0_1] : memref<1x8x128xf32, #tpu.memory_space<vmem>>, vector<1x8x128xf32>
    %1 = vector.shape_cast %0 : vector<1x8x128xf32> to vector<8x128xf32>
    %c0_2 = arith.constant 0 : index
    %c0_3 = arith.constant 0 : index
    %c0_4 = arith.constant 0 : index
    %2 = vector.load %arg3[%c0_2, %c0_3, %c0_4] : memref<1x16x128xf32, #tpu.memory_space<vmem>>, vector<1x16x128xf32>
    %3 = vector.shape_cast %2 : vector<1x16x128xf32> to vector<16x128xf32>
    %4 = arith.truncf %1 : vector<8x128xf32> to vector<8x128xbf16>
    %5 = arith.truncf %3 : vector<16x128xf32> to vector<16x128xbf16>
    %c0_5 = arith.constant 0 : index
    %c0_6 = arith.constant 0 : index
    %6 = vector.load %arg4[%c0_5, %c0_6] : memref<128x64xbf16, #tpu.memory_space<vmem>>, vector<128x64xbf16>
    %cst = arith.constant dense<0.000000e+00> : vector<8x64xf32>
    %7 = tpu.matmul %4, %6, %cst {dimension_numbers = #tpu.dot_dimension_numbers<[1], [0], [0], [1], [0, 0, 1, 1], [], []>} : vector<8x128xbf16>, vector<128x64xbf16>, vector<8x64xf32> -> vector<8x64xf32>
    %c0_7 = arith.constant 0 : index
    %c0_8 = arith.constant 0 : index
    %8 = vector.load %arg5[%c0_7, %c0_8] : memref<1x64xf32, #tpu.memory_space<vmem>>, vector<1x64xf32>
    %9 = vector.broadcast %8 : vector<1x64xf32> to vector<8x64xf32>
    %10 = arith.addf %7, %9 : vector<8x64xf32>
    %c0_9 = arith.constant 0 : index
    %c0_10 = arith.constant 0 : index
    %11 = vector.load %arg6[%c0_9, %c0_10] : memref<128x64xbf16, #tpu.memory_space<vmem>>, vector<128x64xbf16>
    %cst_11 = arith.constant dense<0.000000e+00> : vector<16x64xf32>
    %12 = tpu.matmul %5, %11, %cst_11 {dimension_numbers = #tpu.dot_dimension_numbers<[1], [0], [0], [1], [0, 0, 1, 1], [], []>} : vector<16x128xbf16>, vector<128x64xbf16>, vector<16x64xf32> -> vector<16x64xf32>
    %c0_12 = arith.constant 0 : index
    %c0_13 = arith.constant 0 : index
    %13 = vector.load %arg7[%c0_12, %c0_13] : memref<1x64xf32, #tpu.memory_space<vmem>>, vector<1x64xf32>
    %14 = vector.broadcast %13 : vector<1x64xf32> to vector<16x64xf32>
    %15 = arith.addf %12, %14 : vector<16x64xf32>
    %c0_14 = arith.constant 0 : index
    %c0_15 = arith.constant 0 : index
    %16 = vector.load %arg8[%c0_14, %c0_15] : memref<128x64xbf16, #tpu.memory_space<vmem>>, vector<128x64xbf16>
    %cst_16 = arith.constant dense<0.000000e+00> : vector<16x64xf32>
    %17 = tpu.matmul %5, %16, %cst_16 {dimension_numbers = #tpu.dot_dimension_numbers<[1], [0], [0], [1], [0, 0, 1, 1], [], []>} : vector<16x128xbf16>, vector<128x64xbf16>, vector<16x64xf32> -> vector<16x64xf32>
    %c0_17 = arith.constant 0 : index
    %c0_18 = arith.constant 0 : index
    %18 = vector.load %arg9[%c0_17, %c0_18] : memref<1x64xf32, #tpu.memory_space<vmem>>, vector<1x64xf32>
    %19 = vector.broadcast %18 : vector<1x64xf32> to vector<16x64xf32>
    %20 = arith.addf %17, %19 : vector<16x64xf32>
    %21 = vector.shape_cast %10 : vector<8x64xf32> to vector<8x4x16xf32>
    %22 = tpu.transpose %21, [1, 0, 2] : vector<8x4x16xf32> -> vector<4x8x16xf32>
    %23 = arith.truncf %22 : vector<4x8x16xf32> to vector<4x8x16xbf16>
    %24 = vector.shape_cast %15 : vector<16x64xf32> to vector<16x4x16xf32>
    %25 = tpu.transpose %24, [1, 0, 2] : vector<16x4x16xf32> -> vector<4x16x16xf32>
    %26 = arith.truncf %25 : vector<4x16x16xf32> to vector<4x16x16xbf16>
    %27 = vector.shape_cast %20 : vector<16x64xf32> to vector<16x4x16xf32>
    %28 = tpu.transpose %27, [1, 0, 2] : vector<16x4x16xf32> -> vector<4x16x16xf32>
    %29 = arith.truncf %28 : vector<4x16x16xf32> to vector<4x16x16xbf16>
    "tpu.trace_start"() <{level = 10 : i32, message = "hqd,hkd->hqk"}> : () -> ()
    %cst_19 = arith.constant dense<0.000000e+00> : vector<4x8x16xf32>
    %30 = tpu.matmul %23, %26, %cst_19 {dimension_numbers = #tpu.dot_dimension_numbers<[2], [2], [1], [1], [0, 0, 0, 1, 1, 1], [0], [0]>} : vector<4x8x16xbf16>, vector<4x16x16xbf16>, vector<4x8x16xf32> -> vector<4x8x16xf32>
    "tpu.trace_stop"() : () -> ()
    %cst_20 = arith.constant 2.500000e-01 : f32
    %31 = vector.broadcast %cst_20 : f32 to vector<4x8x16xf32>
    %32 = arith.mulf %30, %31 : vector<4x8x16xf32>
    %cst_21 = arith.constant dense<0xFF800000> : vector<4x8xf32>
    %33 = vector.multi_reduction <maximumf>, %32, %cst_21 [2] : vector<4x8x16xf32> to vector<4x8xf32>
    %34 = vector.shape_cast %33 : vector<4x8xf32> to vector<4x8x1xf32>
    %35 = vector.broadcast %34 : vector<4x8x1xf32> to vector<4x8x16xf32>
    %36 = arith.subf %32, %35 : vector<4x8x16xf32>
    %37 = math.exp %36 : vector<4x8x16xf32>
    %cst_22 = arith.constant dense<0.000000e+00> : vector<4x8xf32>
    %38 = vector.multi_reduction <add>, %37, %cst_22 [2] : vector<4x8x16xf32> to vector<4x8xf32>
    %39 = vector.shape_cast %38 : vector<4x8xf32> to vector<4x8x1xf32>
    %40 = tpu.reciprocal %39 {approx = true} : vector<4x8x1xf32> -> vector<4x8x1xf32>
    %41 = vector.broadcast %40 : vector<4x8x1xf32> to vector<4x8x16xf32>
    %42 = arith.mulf %37, %41 : vector<4x8x16xf32>
    %43 = arith.truncf %42 : vector<4x8x16xf32> to vector<4x8x16xbf16>
    "tpu.trace_start"() <{level = 10 : i32, message = "hqk,hkd->hqd"}> : () -> ()
    %cst_23 = arith.constant dense<0.000000e+00> : vector<4x8x16xf32>
    %44 = tpu.matmul %43, %29, %cst_23 {dimension_numbers = #tpu.dot_dimension_numbers<[2], [1], [1], [2], [0, 0, 0, 1, 1, 2], [0], [0]>} : vector<4x8x16xbf16>, vector<4x16x16xbf16>, vector<4x8x16xf32> -> vector<4x8x16xf32>
    "tpu.trace_stop"() : () -> ()
    %45 = tpu.transpose %44, [1, 0, 2] : vector<4x8x16xf32> -> vector<8x4x16xf32>
    %46 = vector.shape_cast %45 : vector<8x4x16xf32> to vector<8x64xf32>
    %47 = arith.truncf %46 : vector<8x64xf32> to vector<8x64xbf16>
    %c0_24 = arith.constant 0 : index
    %c0_25 = arith.constant 0 : index
    %48 = vector.load %arg10[%c0_24, %c0_25] : memref<64x128xbf16, #tpu.memory_space<vmem>>, vector<64x128xbf16>
    %cst_26 = arith.constant dense<0.000000e+00> : vector<8x128xf32>
    %49 = tpu.matmul %47, %48, %cst_26 {dimension_numbers = #tpu.dot_dimension_numbers<[1], [0], [0], [1], [0, 0, 1, 1], [], []>} : vector<8x64xbf16>, vector<64x128xbf16>, vector<8x128xf32> -> vector<8x128xf32>
    %c0_27 = arith.constant 0 : index
    %c0_28 = arith.constant 0 : index
    %50 = vector.load %arg11[%c0_27, %c0_28] : memref<1x128xf32, #tpu.memory_space<vmem>>, vector<1x128xf32>
    %51 = vector.broadcast %50 : vector<1x128xf32> to vector<8x128xf32>
    %52 = arith.addf %49, %51 : vector<8x128xf32>
    %53 = arith.addf %1, %52 : vector<8x128xf32>
    %c0_29 = arith.constant 0 : index
    %c0_30 = arith.constant 0 : index
    %54 = vector.load %arg16[%c0_29, %c0_30] : memref<1x128xf32, #tpu.memory_space<vmem>>, vector<1x128xf32>
    %c0_31 = arith.constant 0 : index
    %c0_32 = arith.constant 0 : index
    %55 = vector.load %arg17[%c0_31, %c0_32] : memref<1x128xf32, #tpu.memory_space<vmem>>, vector<1x128xf32>
    %cst_33 = arith.constant dense<0.000000e+00> : vector<8xf32>
    %56 = vector.multi_reduction <add>, %53, %cst_33 [1] : vector<8x128xf32> to vector<8xf32>
    %57 = vector.shape_cast %56 : vector<8xf32> to vector<8x1xf32>
    %cst_34 = arith.constant 6.400000e+01 : f32
    %58 = vector.broadcast %cst_34 : f32 to vector<8x1xf32>
    %59 = arith.divf %57, %58 : vector<8x1xf32>
    %60 = arith.mulf %53, %53 : vector<8x128xf32>
    %cst_35 = arith.constant dense<0.000000e+00> : vector<8xf32>
    %61 = vector.multi_reduction <add>, %60, %cst_35 [1] : vector<8x128xf32> to vector<8xf32>
    %62 = vector.shape_cast %61 : vector<8xf32> to vector<8x1xf32>
    %cst_36 = arith.constant 6.400000e+01 : f32
    %63 = vector.broadcast %cst_36 : f32 to vector<8x1xf32>
    %64 = arith.divf %62, %63 : vector<8x1xf32>
    %65 = arith.mulf %59, %59 : vector<8x1xf32>
    %66 = arith.subf %64, %65 : vector<8x1xf32>
    %cst_37 = arith.constant 0.000000e+00 : f32
    %67 = vector.broadcast %cst_37 : f32 to vector<8x1xf32>
    %68 = arith.maximumf %66, %67 : vector<8x1xf32>
    %69 = vector.broadcast %59 : vector<8x1xf32> to vector<8x128xf32>
    %70 = arith.subf %53, %69 : vector<8x128xf32>
    %cst_38 = arith.constant 9.99999974E-6 : f32
    %71 = vector.broadcast %cst_38 : f32 to vector<8x1xf32>
    %72 = arith.addf %68, %71 : vector<8x1xf32>
    %73 = math.rsqrt %72 : vector<8x1xf32>
    %74 = vector.broadcast %73 : vector<8x1xf32> to vector<8x128xf32>
    %75 = arith.mulf %70, %74 : vector<8x128xf32>
    %76 = vector.broadcast %54 : vector<1x128xf32> to vector<8x128xf32>
    %77 = arith.mulf %75, %76 : vector<8x128xf32>
    %78 = vector.broadcast %55 : vector<1x128xf32> to vector<8x128xf32>
    %79 = arith.addf %77, %78 : vector<8x128xf32>
    %80 = arith.truncf %79 : vector<8x128xf32> to vector<8x128xbf16>
    %c0_39 = arith.constant 0 : index
    %c0_40 = arith.constant 0 : index
    %81 = vector.load %arg12[%c0_39, %c0_40] : memref<128x256xbf16, #tpu.memory_space<vmem>>, vector<128x256xbf16>
    %cst_41 = arith.constant dense<0.000000e+00> : vector<8x256xf32>
    %82 = tpu.matmul %80, %81, %cst_41 {dimension_numbers = #tpu.dot_dimension_numbers<[1], [0], [0], [1], [0, 0, 1, 1], [], []>} : vector<8x128xbf16>, vector<128x256xbf16>, vector<8x256xf32> -> vector<8x256xf32>
    %c0_42 = arith.constant 0 : index
    %c0_43 = arith.constant 0 : index
    %83 = vector.load %arg13[%c0_42, %c0_43] : memref<1x256xf32, #tpu.memory_space<vmem>>, vector<1x256xf32>
    %84 = vector.broadcast %83 : vector<1x256xf32> to vector<8x256xf32>
    %85 = arith.addf %82, %84 : vector<8x256xf32>
    %cst_44 = arith.constant 0.000000e+00 : f32
    %86 = vector.broadcast %cst_44 : f32 to vector<8x256xf32>
    %87 = arith.maximumf %85, %86 : vector<8x256xf32>
    %88 = arith.truncf %87 : vector<8x256xf32> to vector<8x256xbf16>
    %c0_45 = arith.constant 0 : index
    %c0_46 = arith.constant 0 : index
    %89 = vector.load %arg14[%c0_45, %c0_46] : memref<256x128xbf16, #tpu.memory_space<vmem>>, vector<256x128xbf16>
    %cst_47 = arith.constant dense<0.000000e+00> : vector<8x128xf32>
    %90 = tpu.matmul %88, %89, %cst_47 {dimension_numbers = #tpu.dot_dimension_numbers<[1], [0], [0], [1], [0, 0, 1, 1], [], []>} : vector<8x256xbf16>, vector<256x128xbf16>, vector<8x128xf32> -> vector<8x128xf32>
    %c0_48 = arith.constant 0 : index
    %c0_49 = arith.constant 0 : index
    %91 = vector.load %arg15[%c0_48, %c0_49] : memref<1x128xf32, #tpu.memory_space<vmem>>, vector<1x128xf32>
    %92 = vector.broadcast %91 : vector<1x128xf32> to vector<8x128xf32>
    %93 = arith.addf %90, %92 : vector<8x128xf32>
    %94 = arith.addf %79, %93 : vector<8x128xf32>
    %c0_50 = arith.constant 0 : index
    %c0_51 = arith.constant 0 : index
    %95 = vector.load %arg18[%c0_50, %c0_51] : memref<1x128xf32, #tpu.memory_space<vmem>>, vector<1x128xf32>
    %c0_52 = arith.constant 0 : index
    %c0_53 = arith.constant 0 : index
    %96 = vector.load %arg19[%c0_52, %c0_53] : memref<1x128xf32, #tpu.memory_space<vmem>>, vector<1x128xf32>
    %cst_54 = arith.constant dense<0.000000e+00> : vector<8xf32>
    %97 = vector.multi_reduction <add>, %94, %cst_54 [1] : vector<8x128xf32> to vector<8xf32>
    %98 = vector.shape_cast %97 : vector<8xf32> to vector<8x1xf32>
    %cst_55 = arith.constant 6.400000e+01 : f32
    %99 = vector.broadcast %cst_55 : f32 to vector<8x1xf32>
    %100 = arith.divf %98, %99 : vector<8x1xf32>
    %101 = arith.mulf %94, %94 : vector<8x128xf32>
    %cst_56 = arith.constant dense<0.000000e+00> : vector<8xf32>
    %102 = vector.multi_reduction <add>, %101, %cst_56 [1] : vector<8x128xf32> to vector<8xf32>
    %103 = vector.shape_cast %102 : vector<8xf32> to vector<8x1xf32>
    %cst_57 = arith.constant 6.400000e+01 : f32
    %104 = vector.broadcast %cst_57 : f32 to vector<8x1xf32>
    %105 = arith.divf %103, %104 : vector<8x1xf32>
    %106 = arith.mulf %100, %100 : vector<8x1xf32>
    %107 = arith.subf %105, %106 : vector<8x1xf32>
    %cst_58 = arith.constant 0.000000e+00 : f32
    %108 = vector.broadcast %cst_58 : f32 to vector<8x1xf32>
    %109 = arith.maximumf %107, %108 : vector<8x1xf32>
    %110 = vector.broadcast %100 : vector<8x1xf32> to vector<8x128xf32>
    %111 = arith.subf %94, %110 : vector<8x128xf32>
    %cst_59 = arith.constant 9.99999974E-6 : f32
    %112 = vector.broadcast %cst_59 : f32 to vector<8x1xf32>
    %113 = arith.addf %109, %112 : vector<8x1xf32>
    %114 = math.rsqrt %113 : vector<8x1xf32>
    %115 = vector.broadcast %114 : vector<8x1xf32> to vector<8x128xf32>
    %116 = arith.mulf %111, %115 : vector<8x128xf32>
    %117 = vector.broadcast %95 : vector<1x128xf32> to vector<8x128xf32>
    %118 = arith.mulf %116, %117 : vector<8x128xf32>
    %119 = vector.broadcast %96 : vector<1x128xf32> to vector<8x128xf32>
    %120 = arith.addf %118, %119 : vector<8x128xf32>
    %c0_60 = arith.constant 0 : index
    %c0_61 = arith.constant 0 : index
    %c0_62 = arith.constant 0 : index
    %121 = vector.load %arg20[%c0_60, %c0_61, %c0_62] : memref<1x8x128xf32, #tpu.memory_space<vmem>>, vector<1x8x128xf32>
    %122 = vector.shape_cast %121 : vector<1x8x128xf32> to vector<8x128xf32>
    %123 = vector.shape_cast %120 : vector<8x128xf32> to vector<1x8x128xf32>
    tpu.vector_store %arg20[%c0_60, %c0_61, %c0_62], %123 {strides = array<i32>} : memref<1x8x128xf32, #tpu.memory_space<vmem>>, vector<1x8x128xf32>,
    return
  }
  func.func @transform_0(%arg0: i32, %arg1: i32) -> (i32, i32, i32) {
    %c0_i32 = arith.constant 0 : i32
    %c0_i32_0 = arith.constant 0 : i32
    return %arg0, %arg1, %c0_i32 : i32, i32, i32
  }
  func.func @transform_1(%arg0: i32, %arg1: i32) -> (i32, i32, i32) {
    %c0_i32 = arith.constant 0 : i32
    %c0_i32_0 = arith.constant 0 : i32
    %c0_i32_1 = arith.constant 0 : i32
    return %arg0, %c0_i32, %c0_i32_0 : i32, i32, i32
  }
  func.func @transform_2(%arg0: i32, %arg1: i32) -> (i32, i32) {
    %c0_i32 = arith.constant 0 : i32
    %c0_i32_0 = arith.constant 0 : i32
    %c0_i32_1 = arith.constant 0 : i32
    return %c0_i32, %c0_i32_0 : i32, i32
  }
  func.func @transform_3(%arg0: i32, %arg1: i32) -> (i32, i32) {
    %c0_i32 = arith.constant 0 : i32
    %c0_i32_0 = arith.constant 0 : i32
    %c0_i32_1 = arith.constant 0 : i32
    return %c0_i32, %c0_i32_0 : i32, i32
  }
  func.func @transform_4(%arg0: i32, %arg1: i32) -> (i32, i32) {
    %c0_i32 = arith.constant 0 : i32
    %c0_i32_0 = arith.constant 0 : i32
    %c0_i32_1 = arith.constant 0 : i32
    return %c0_i32, %c0_i32_0 : i32, i32
  }
  func.func @transform_5(%arg0: i32, %arg1: i32) -> (i32, i32) {
    %c0_i32 = arith.constant 0 : i32
    %c0_i32_0 = arith.constant 0 : i32
    %c0_i32_1 = arith.constant 0 : i32
    return %c0_i32, %c0_i32_0 : i32, i32
  }
  func.func @transform_6(%arg0: i32, %arg1: i32) -> (i32, i32) {
    %c0_i32 = arith.constant 0 : i32
    %c0_i32_0 = arith.constant 0 : i32
    %c0_i32_1 = arith.constant 0 : i32
    return %c0_i32, %c0_i32_0 : i32, i32
  }
  func.func @transform_7(%arg0: i32, %arg1: i32) -> (i32, i32) {
    %c0_i32 = arith.constant 0 : i32
    %c0_i32_0 = arith.constant 0 : i32
    %c0_i32_1 = arith.constant 0 : i32
    return %c0_i32, %c0_i32_0 : i32, i32
  }
  func.func @transform_8(%arg0: i32, %arg1: i32) -> (i32, i32) {
    %c0_i32 = arith.constant 0 : i32
    %c0_i32_0 = arith.constant 0 : i32
    %c0_i32_1 = arith.constant 0 : i32
    return %c0_i32, %c0_i32_0 : i32, i32
  }
  func.func @transform_9(%arg0: i32, %arg1: i32) -> (i32, i32) {
    %c0_i32 = arith.constant 0 : i32
    %c0_i32_0 = arith.constant 0 : i32
    %c0_i32_1 = arith.constant 0 : i32
    return %c0_i32, %c0_i32_0 : i32, i32
  }
  func.func @transform_10(%arg0: i32, %arg1: i32) -> (i32, i32) {
    %c0_i32 = arith.constant 0 : i32
    %c0_i32_0 = arith.constant 0 : i32
    %c0_i32_1 = arith.constant 0 : i32
    return %c0_i32, %c0_i32_0 : i32, i32
  }
  func.func @transform_11(%arg0: i32, %arg1: i32) -> (i32, i32) {
    %c0_i32 = arith.constant 0 : i32
    %c0_i32_0 = arith.constant 0 : i32
    %c0_i32_1 = arith.constant 0 : i32
    return %c0_i32, %c0_i32_0 : i32, i32
  }
  func.func @transform_12(%arg0: i32, %arg1: i32) -> (i32, i32) {
    %c0_i32 = arith.constant 0 : i32
    %c0_i32_0 = arith.constant 0 : i32
    %c0_i32_1 = arith.constant 0 : i32
    return %c0_i32, %c0_i32_0 : i32, i32
  }
  func.func @transform_13(%arg0: i32, %arg1: i32) -> (i32, i32) {
    %c0_i32 = arith.constant 0 : i32
    %c0_i32_0 = arith.constant 0 : i32
    %c0_i32_1 = arith.constant 0 : i32
    return %c0_i32, %c0_i32_0 : i32, i32
  }
  func.func @transform_14(%arg0: i32, %arg1: i32) -> (i32, i32) {
    %c0_i32 = arith.constant 0 : i32
    %c0_i32_0 = arith.constant 0 : i32
    %c0_i32_1 = arith.constant 0 : i32
    return %c0_i32, %c0_i32_0 : i32, i32
  }
  func.func @transform_15(%arg0: i32, %arg1: i32) -> (i32, i32) {
    %c0_i32 = arith.constant 0 : i32
    %c0_i32_0 = arith.constant 0 : i32
    %c0_i32_1 = arith.constant 0 : i32
    return %c0_i32, %c0_i32_0 : i32, i32
  }
  func.func @transform_16(%arg0: i32, %arg1: i32) -> (i32, i32) {
    %c0_i32 = arith.constant 0 : i32
    %c0_i32_0 = arith.constant 0 : i32
    %c0_i32_1 = arith.constant 0 : i32
    return %c0_i32, %c0_i32_0 : i32, i32
  }
  func.func @transform_17(%arg0: i32, %arg1: i32) -> (i32, i32) {
    %c0_i32 = arith.constant 0 : i32
    %c0_i32_0 = arith.constant 0 : i32
    %c0_i32_1 = arith.constant 0 : i32
    return %c0_i32, %c0_i32_0 : i32, i32
  }
  func.func @transform_18(%arg0: i32, %arg1: i32) -> (i32, i32, i32) {
    %c0_i32 = arith.constant 0 : i32
    %c0_i32_0 = arith.constant 0 : i32
    return %arg0, %arg1, %c0_i32 : i32, i32, i32
  }
}

</mosaic_0001>

<bundles_post_ra>
// kernel: tpu_custom_call.1
= control target key start
LH: loop header
LB: loop body
LE: loop exit
PB: predicated region body
PF: predicated region fallthrough
CT: control target
= control target key end

     0   :  { %s4182_s0 = inlined_call_operand.vmem [shape: f32[4,16,128], index: 0, kind: input, shape index: {}]   ;;  %s4183_s1 = inlined_call_operand.hbm [shape: f32[4,16,128], index: 1, kind: input, shape index: {}]   ;;  %s4184_s2 = inlined_call_operand.vmem [shape: bf16[128,64], index: 2, kind: input, shape index: {}]   ;;  %s4185_s3 = inlined_call_operand.hbm [shape: f32[1,64], index: 3, kind: input, shape index: {}]   ;;  %s4186_s4 = inlined_call_operand.vmem [shape: bf16[128,64], index: 4, kind: input, shape index: {}]   ;;  %s4187_s5 = inlined_call_operand.vmem [shape: f32[1,64], index: 5, kind: input, shape index: {}]   ;;  %s4188_s6 = inlined_call_operand.vmem [shape: bf16[128,64], index: 6, kind: input, shape index: {}]   ;;  %s4189_s7 = inlined_call_operand.hbm [shape: f32[1,64], index: 7, kind: input, shape index: {}]   ;;  %s4190_s8 = inlined_call_operand.vmem [shape: bf16[64,128], index: 8, kind: input, shape index: {}]   ;;  %s4191_s9 = inlined_call_operand.vmem [shape: f32[1,128], index: 9, kind: input, shape index: {}]   ;;  %s4192_s10 = inlined_call_operand.vmem [shape: bf16[128,256], index: 10, kind: input, shape index: {}]   ;;  %s4193_s11 = inlined_call_operand.vmem [shape: f32[1,256], index: 11, kind: input, shape index: {}]   ;;  %s4194_s12 = inlined_call_operand.hbm [shape: bf16[256,128], index: 12, kind: input, shape index: {}]   ;;  %s4195_s13 = inlined_call_operand.vmem [shape: f32[1,128], index: 13, kind: input, shape index: {}]   ;;  %s4196_s14 = inlined_call_operand.vmem [shape: f32[1,128], index: 14, kind: input, shape index: {}]   ;;  %s4197_s15 = inlined_call_operand.vmem [shape: f32[1,128], index: 15, kind: input, shape index: {}]   ;;  %s4198_s16 = inlined_call_operand.vmem [shape: f32[1,128], index: 16, kind: input, shape index: {}]   ;;  %s4199_s17 = inlined_call_operand.vmem [shape: f32[1,128], index: 17, kind: input, shape index: {}]   ;;  %s4200_s18 = inlined_call_operand.hbm [shape: f32[4,16,128], index: 18, kind: output, shape index: {}]  }
   0x1   :  { %4213 = sst [smem:[#allocation21_spill]] %s4182_s0 }
   0x2   :  { %4214 = sst [smem:[#allocation22_spill]] %s4183_s1 }
   0x3   :  { %4215 = sst [smem:[#allocation23_spill]] %s4184_s2 }
   0x4   :  { %4216 = sst [smem:[#allocation24_spill]] %s4185_s3 }
   0x5   :  { %4217 = sst [smem:[#allocation25_spill]] %s4186_s4 }
   0x6   :  { %4218 = sst [smem:[#allocation26_spill]] %s4188_s6 }
   0x7   :  { %4219 = sst [smem:[#allocation27_spill]] %s4189_s7 }
   0x8   :  { %4220 = sst [smem:[#allocation28_spill]] %s4190_s8 }
   0x9   :  { %4221 = sst [smem:[#allocation29_spill]] %s4191_s9 }
   0xa   :  { %4222 = sst [smem:[#allocation30_spill]] %s4192_s10 }
   0xb   :  { %4223 = sst [smem:[#allocation31_spill]] %s4193_s11 }
   0xc   :  { %4224 = sst [smem:[#allocation32_spill]] %s4194_s12 }
   0xd   :  { %4225 = sst [smem:[#allocation33_spill]] %s4195_s13 }
   0xe   :  { %4226 = sst [smem:[#allocation34_spill]] %s4196_s14 }
   0xf   :  { %4227 = sst [smem:[#allocation35_spill]] %s4197_s15 }
  0x10   :  { %4228 = sst [smem:[#allocation36_spill]] %s4198_s16 }
  0x11   :  { %4229 = sst [smem:[#allocation37_spill]] %s4199_s17 }
  0x12   :  { %4230 = sst [smem:[#allocation38_spill]] %s4200_s18 }
  0x13   :  { %23 = vsyncpa [#allocation3], 0 }
  0x14   :  { %25 = vsyncpa [#allocation3 + $0x1], 0 }
  0x15   :  { %26 = vsyncpa [#allocation6], 0 }
  0x16   :  { %27 = vsyncpa [#allocation9], 0 }
  0x17   :  { %28 = vsyncpa [#allocation4], 0 }
  0x18   :  { %30 = vsyncpa [#allocation4 + $0x1], 0  ;;  %s3396_s27 = smov 0   ;;  %s3398_s28 = smov 0  }
  0x19   :  { %s3400_s29 = smov 0   ;;  %s3402_s30 = smov 0  }
  0x1a   :  { %s3404_s0 = smov 0   ;;  %s3406_s19 = smov 0  }
  0x1b   :  { %s3408_s1 = smov 0   ;;  %s3410_s20 = smov 0  }
  0x1c   :  { %s3412_s21 = smov 0   ;;  %s3414_s22 = smov 0  }
  0x1d   :  { %s3416_s2 = smov 0  }
  0x1e LB: > { %4231 = sst [smem:[#allocation15_spill]] %s3243_s27  ;;  %s2492_s23 = sadd.s32 4294967295, %s3283_s2   ;;  %s3283_s2 = sphi %s3416_s2, %s36_s2   ;;  %s3279_s22 = sphi %s3414_s22, %s4278_s22   ;;  %s3275_s21 = sphi %s3412_s21, %s4271_s21   ;;  %s3271_s20 = sphi %s3410_s20, %s4277_s20   ;;  %s3267_s1 = sphi %s3408_s1, %s4270_s1   ;;  %s3263_s19 = sphi %s3406_s19, %s4276_s19   ;;  %s3259_s0 = sphi %s3404_s0, %s4275_s0   ;;  %s3255_s30 = sphi %s3402_s30, %s4274_s30   ;;  %s3251_s29 = sphi %s3400_s29, %s4273_s29   ;;  %s3247_s28 = sphi %s3398_s28, %s4272_s28   ;;  %s3243_s27 = sphi %s3396_s27, %s4268_s27  }
  0x1f   : > { %4232 = sst [smem:[#allocation16_spill]] %s3247_s28  ;;  %s2493_s24 = sadd.s32 4294967294, %s3283_s2  }
  0x20   : > { %4233 = sst [smem:[#allocation17_spill]] %s3275_s21  ;;  %p96_p0 = scmp.ne.s32.totalorder %s3259_s0, %s3255_s30 }
  0x21   : > { %p3452_p1 = scmp.eq.s32.totalorder %s2492_s23, 0  ;;  %p457_p2 = scmp.ne.s32.totalorder %s3251_s29, %s3247_s28 }
  0x22   : > { %p458_p4 = scmp.eq.s32.totalorder %s2492_s23, 7  ;;  %p463_p5 = scmp.ne.s32.totalorder %s3247_s28, %s3243_s27 }
  0x23   : > { %p3461_p3 = por %p3452_p1, %p96_p0  ;;  %p464_p6 = scmp.eq.s32.totalorder %s2493_s24, 7 }
  0x24   : > { %p3467_p7 = por %p458_p4, %p457_p2  ;;  %p2494_p8 = scmp.ge.s32.totalorder %s3283_s2, 1 }
  0x25   : > { %p3472_p9 = por %p464_p6, %p463_p5  ;;  %p471_p10 = scmp.lt.s32.totalorder %s3283_s2, 9 }
  0x26   : > { %s4236_s18 = scalar_select %p3467_p7, 1, 0 }
  0x27   : > { %s4238_s30 = scalar_select %p3472_p9, 1, 0 }
  0x28   : > { %4237 = sst [smem:[#allocation18_spill]] %s4236_s18  ;;  %p3480_p11 = pnand %p2494_p8, %p471_p10 }
  0x29   : > { %4239 = sst [smem:[#allocation19_spill]] %s4238_s30  ;;  %s3285_s23 = smov [#allocation5]  }
  0x2a   : > { %s4240_s3 = sld [smem:[#allocation24_spill]]  ;;  %p2841_p12 = pneg %p3480_p11 }
  0x2b   : > { %s488_s24 = sshll.u32 %s3285_s23, 4  ;;  %s4242_s7 = sld [smem:[#allocation27_spill]]  ;;  %s489_s24 = int_to_ptr.vmem [resolvable:$true] %s488_s24 }
  0x2c   : > { %p3491_p13 = pnand %p2841_p12, %p3452_p1  ;;  %s4244_s12 = sld [smem:[#allocation32_spill]] }
  0x2d   : > { %s3286_s28 = smov [#allocation7]   ;;  %s3287_s27 = smov [#allocation8]  }
  0x2e   : > { %s509_s18 = sshll.u32 %s3286_s28, 4  ;;  %s3289_s26 = smov 4   ;;  %s510_s18 = int_to_ptr.vmem [resolvable:$true] %s509_s18 }
  0x2f   : > { %s45_s28 = sadd.s32 1, %s3275_s21  ;;  %p90_p2 = scmp.ne.s32.totalorder %s3263_s19, %s3259_s0 }
  0x30   : > { %s486_s13 = sshll.u32 %s4240_s3, 4  ;;  %s3288_s3 = smov 64   ;;  %s487_s13 = int_to_ptr.hbm [resolvable:$true] %s486_s13 }
  0x31   : > { %s507_s30 = sshll.u32 %s4242_s7, 4  ;;  %s532_s7 = sshll.u32 %s3287_s27, 4  ;;  %s508_s30 = int_to_ptr.hbm [resolvable:$true] %s507_s30  ;;  %s533_s7 = int_to_ptr.vmem [resolvable:$true] %s532_s7 }
  0x32   : > { %s530_s23 = sshll.u32 %s4244_s12, 4  ;;  %p46_p0 = scmp.ge.s32.totalorder %s45_s28, 2  ;;  %s531_s23 = int_to_ptr.hbm [resolvable:$true] %s530_s23 }
  0x33   : > { %2844 = dma.hbm_to_vmem [thread:$0]  (!%p3491_p13), %s487_s13, 16, %s489_s24, [#allocation6]  }
  0x34   : > { %2847 = dma.hbm_to_vmem [thread:$0]  (!%p3491_p13), %s508_s30, 16, %s510_s18, [#allocation6]  }
  0x35   : > { %2850 = dma.hbm_to_vmem [thread:$0]  (!%p3491_p13), %s531_s23, 2048, %s533_s7, [#allocation9], %s3288_s3, %s3288_s3, %s3289_s26  }
  0x36   : > { %s48_s13 = sadd.s32 1, %s3279_s22  ;;  %s83_s24 = sadd.s32 1, %s3263_s19 }
  0x37   : > { %s4280_s28 = smov (%p46_p0, %s45_s28), 0  ;;  %s4282_s13 = smov (!%p46_p0, %s48_s13), %s3279_s22 }
  0x38   : > { %4245 = sst [smem:[#allocation20_spill]] %s4280_s28  ;;  %p91_p4 = scmp.eq.s32.totalorder %s3283_s2, 0 }
  0x39   : > { %s443_s30 = ssub.s32 %s3275_s21, %s4280_s28  ;;  %p50_p5 = scmp.ge.s32.totalorder %s4282_s13, 4 }
  0x3a   : > { %p2862_p6 = scmp.lt.s32.totalorder %s3283_s2, 8  ;;  %p3516_p8 = por %p91_p4, %p90_p2 }
  0x3b   : > { %s572_s16 = sand.u32 1, %s3263_s19   ;;  %s4284_s13 = smov (%p50_p5, %s4282_s13), 0 }
  0x3c   : > { %s2499_s23 = sshll.u32 %s572_s16, 4  ;;  %s80_s18 = ssub.s32 %s3279_s22, %s4284_s13 }
  0x3d   : > { %p81_p10 = scmp.eq.s32.totalorder %s80_s18, 0  ;;  %s444_s27 = sor.u32 %s443_s30, %s80_s18 }
  0x3e   : > { %p445_p12 = scmp.eq.s32.totalorder %s444_s27, 0  ;;  %s2764_s3 = sshll.u32 %s3279_s22, 4 }
  0x3f   : > { %s3527_s26 = scalar_select %p81_p10, %s3263_s19, %s83_s24  }
  0x40   : > { %s4247_s12 = sadd.s32 1, %s3251_s29  ;;  %s4248_s14 = sld [smem:[#allocation22_spill]] }
  0x41   : > { %s3532_s28 = scalar_select %p445_p12, %s3251_s29, %s4247_s12  }
  0x42   : > { %s576_s9 = scalar_lea.vmem [#allocation2], %s2499_s23  ;;  %p2852_p13 = pnand %p2862_p6, %p3516_p8 }
  0x43   : > { %s584_s8 = sshll.u32 %s576_s9, 4  ;;  %s573_s30 = scalar_lea.sflag [#allocation3], %s572_s16  ;;  %s585_s8 = int_to_ptr.vmem [resolvable:$true] %s584_s8 }
  0x44   : > { %s3290_s18 = smov 128   ;;  %s3291_s27 = smov 8  }
  0x45   : > { %596 = sbr.rel (%p3480_p11) target bundleno = 1833 (0x729), region = 92  ;;  %s598_s12 = sand.u32 (!%p3480_p11), 1, %s3259_s0  }
  0x46   : > { %s581_s10 = scalar_lea.hbm %s4248_s14, %s2764_s3  ;;  %s3544_s15 = sshll.u32 (!%p3480_p11), %s598_s12, 4 }
  0x47   : > { %s582_s6 = sshll.u32 %s581_s10, 4  ;;  %s599_s9 = scalar_lea.sflag (!%p3480_p11), [#allocation3], %s598_s12  ;;  %s583_s6 = int_to_ptr.hbm [resolvable:$true] %s582_s6 }
  0x48   : > { %2854 = dma.hbm_to_vmem [thread:$0]  (!%p2852_p13), %s583_s6, 256, %s585_s8, %s573_s30, %s3290_s18, %s3290_s18, %s3291_s27  }
  0x49   : > { %s602_s10 = scalar_lea.vmem (!%p3480_p11), [#allocation2], %s3544_s15 }
  0x4a   : > { %3226 = dma.done.wait (%p3461_p3), %s599_s9, 256  }
  0x4b   : > { %3228 = vsyncadd (%p3461_p3), %s599_s9, 4294967040 }
  0x4c   : > { %3230 = dma.done.wait (%p3452_p1), [#allocation6], 32  }
  0x4d   : > { %3232 = vsyncadd (%p3452_p1), [#allocation6], 4294967264 }
  0x4e   : > { %3234 = dma.done.wait (%p3452_p1), [#allocation9], 2048  }
  0x4f   : > { %3236 = vsyncadd (%p3452_p1), [#allocation9], 4294965248  ;;  %s4249_s11 = sld [smem:[#allocation23_spill]]  ;;  %p679_p1 = scmp.lt.s32.totalorder %s3271_s20, 3  ;;  %v689_v17 = vld [vmem:[%s602_s10] sm:$0xff]  ;;  %v690_v18 = vld [vmem:[%s602_s10 + $0x8] sm:$0xff] }
  0x50   : > { %s4250_s4 = sld [smem:[#allocation25_spill]]  ;;  %p681_p3 = scmp.lt.s32.totalorder %s3267_s1, 1  ;;  %v3621_v20 = vpack.c.bf16 %v690_v18, %v689_v17  ;;  %v3001_v21 = vld [vmem:[#allocation5] ss:$0 sm:$0xff]  ;;  %v3295_v32 = vmov 1983009808  }
  0x51   : > { %s680_s6 = scalar_select %p679_p1, %s3271_s20, 3  ;;  %v3002_v25 = vld [vmem:[%s4187_s5] ss:$0 sm:$0xff]  ;;  %v954_v33 = vunpack.c.l.s4 %v3295_v32  ;;  %vm949_vm0 = vcmask 1047556   ;;  %v3296_v52 = vmov 1934713408  }
  0x52   : > { %s682_s8 = scalar_select %p681_p3, %s3267_s1, 1  ;;  %v978_v53 = vunpack.c.l.s4 %v3296_v52  ;;  %vm1564_vm1 = vcmask 130048   ;;  %vm1919_vm2 = vcmask 261120   ;;  %vm1921_vm3 = vcmask 392192  }
  0x53   : > { %s2508_s25 = sshll.u32 %s680_s6, 1  ;;  %s4251_s17 = sld [smem:[#allocation21_spill]]  ;;  %v3639_v36 = vunpack.c.0.s8 %v954_v33  ;;  %vm1960_vm4 = vcmask 523264  }
  0x54   : > { %s684_s7 = sadd.s32 %s2508_s25, %s682_s8  ;;  %s3292_s23 = smov 96  }
  0x55   : > { %v2772_v0 = vld [vmem:[%s4249_s11 + $0x38] sm:$0xff]  ;;  %v2771_v2 = vld [vmem:[%s4249_s11 + $0x30] sm:$0xff]  ;;  %v2770_v4 = vld [vmem:[%s4249_s11 + $0x28] sm:$0xff]  ;;  %s2509_s18 = sshll.u32 %s684_s7, 3  ;;  %s3293_s15 = smov 80  }
  0x56   : > { %v2780_v1 = vld [vmem:[%s4250_s4 + $0x38] sm:$0xff]  ;;  %761 = vmatpush.bf16.msra.mxu0 %v2772_v0  ;;  %v2779_v3 = vld [vmem:[%s4250_s4 + $0x30] sm:$0xff]  ;;  %v2778_v5 = vld [vmem:[%s4250_s4 + $0x28] sm:$0xff]  ;;  %s3294_s10 = smov 112   ;;  %s4252_s12 = sld [smem:[#allocation26_spill]] }
  0x57   : > { %842 = vmatpush.bf16.msra.mxu1 %v2780_v1  ;;  %v2769_v6 = vld [vmem:[%s4249_s11 + $0x20] sm:$0xff]  ;;  %v2768_v8 = vld [vmem:[%s4249_s11 + $0x18] sm:$0xff]  ;;  %v2767_v10 = vld [vmem:[%s4249_s11 + $0x10] sm:$0xff]  ;;  %s4253_s14 = sld [smem:[#allocation28_spill]] }
  0x58   : > { %v2777_v7 = vld [vmem:[%s4250_s4 + $0x20] sm:$0xff]  ;;  %v2776_v9 = vld [vmem:[%s4250_s4 + $0x18] sm:$0xff]  ;;  %v2775_v11 = vld [vmem:[%s4250_s4 + $0x10] sm:$0xff]  ;;  %s4254_s27 = sld [smem:[#allocation29_spill]] }
  0x59   : > { %v2766_v12 = vld [vmem:[%s4249_s11 + $0x8] sm:$0xff]  ;;  %s3608_s21 = scalar_lea.vmem %s4251_s17, %s2509_s18  ;;  %v2765_v14 = vld [vmem:[%s4249_s11] sm:$0xff]  ;;  %s4256_s17 = sld [smem:[#allocation34_spill]] }
  0x5a   : > { %762 = vmatpush.bf16.msra.mxu0 %v2771_v2  ;;  %v2774_v13 = vld [vmem:[%s4250_s4 + $0x8] sm:$0xff]  ;;  %v2773_v15 = vld [vmem:[%s4250_s4] sm:$0xff]  ;;  %s4257_s7 = sld [smem:[#allocation35_spill]] }
  0x5b   : > { %843 = vmatpush.bf16.msra.mxu1 %v2779_v3  ;;  %v688_v16 = vld [vmem:[%s3608_s21] sm:$0xff]  ;;  %v3661_v3 = vunpack.c.0.s8 %v978_v53  ;;  %s4258_s30 = sld [smem:[#allocation31_spill]] }
  0x5c   : > { %v691_v19 = vpack.c.bf16 %v688_v16, %v688_v16  ;;  %s4259_s9 = sld [smem:[#allocation33_spill]] }
  0x5e   : > { %763 = vmatpush.bf16.msra.mxu0 %v2770_v4 }
  0x5f   : > { %844 = vmatpush.bf16.msra.mxu1 %v2778_v5 }
  0x62   : > { %764 = vmatpush.bf16.msra.mxu0 %v2769_v6 }
  0x63   : > { %845 = vmatpush.bf16.msra.mxu1 %v2777_v7 }
  0x66   : > { %765 = vmatpush.bf16.msra.mxu0 %v2768_v8 }
  0x67   : > { %846 = vmatpush.bf16.msra.mxu1 %v2776_v9 }
  0x6a   : > { %766 = vmatpush.bf16.msra.mxu0 %v2767_v10 }
  0x6b   : > { %847 = vmatpush.bf16.msra.mxu1 %v2775_v11 }
  0x6e   : > { %767 = vmatpush.bf16.msra.mxu0 %v2766_v12 }
  0x6f   : > { %848 = vmatpush.bf16.msra.mxu1 %v2774_v13 }
  0x72   : > { %768 = vmatpush.bf16.msra.mxu0 %v2765_v14 }
  0x73   : > { %849 = vmatpush.bf16.msra.mxu1 %v2773_v15 }
  0x75   : > { %769 = vmatmul.bf16.vlgmr.msra.gmra.mxu0 %v691_v19 }
  0x76   : > { %850 = vmatmul.bf16.vlgmr.msra.gmra.mxu1 %v3621_v20 }
  0xf2   : > { %v770_v22 = vpop.f32.mrf.mxu0 }
  0xf3   : > { %v851_v23 = vpop.f32.mrf.mxu1  ;;  %v771_v24 = vadd.f32 %v3001_v21, %v770_v22 }
  0xf4   : > { %v3628_v28 = vadd.f32 %v3002_v25, %v851_v23 }
  0xf5   : > { %942 = vrot.lane.b32.xlu2 %v771_v24, %s3292_s23  ;;  %v951_v35 = vrot.slane %v771_v24, 4 }
  0xf6   : > { %v1085_v63 = vrot.slane %v3628_v28, 4 }
  0xfa   : > { %v772_v27 = vpop.f32.mrf.mxu0 }
  0xfb   : > { %v853_v26 = vpop.f32.mrf.mxu1 }
  0xfc   : > { %v3630_v29 = vadd.f32 %v3002_v25, %v853_v26 }
  0xfd   : > { %945 = vrot.lane.b32.xlu2 %v771_v24, %s3293_s15 }
  0xfe   : > { %v2981_v30 = vpack.i.bf16 %v3630_v29, %v3628_v28  ;;  %v1141_v62 = vrot.slane %v3630_v29, 4 }
 0x100   : > { %2982 = vrot.lane.b32.xlu1 %v2981_v30, %s3293_s15  ;;  %2972 = vrot.lane.b32.xlu0 %v2981_v30, %s3294_s10 }
 0x108   : > { %2977 = vrot.lane.b32.xlu0 %v2981_v30, %s3292_s23  ;;  %939 = vrot.lane.b32.xlu1 %v771_v24, %s3294_s10 }
 0x14f   : > { %v943_v31 = vpop.permute.xlu2 %942 }
 0x150   : > { %v948_v34 = vrot.slane %v943_v31, 4  ;;  %v952_v38 = vsel %vm949_vm0, %v943_v31, %v951_v35 }
 0x151   : > { %v3647_v50 = vperm.slane %v952_v38, %v3639_v36 }
 0x152   : > { %v950_v37 = vsel %vm949_vm0, %v948_v34, %v771_v24 }
 0x153   : > { %v3644_v49 = vperm.slane %v950_v37, %v3639_v36  ;;  %v987_v1 = vrot.slane %v3647_v50, 4 }
 0x155   : > { %v975_v0 = vrot.slane %v3644_v49, 4 }
 0x157   : > { %v946_v51 = vpop.permute.xlu2 %945 }
 0x158   : > { %v961_v61 = vrot.slane %v946_v51, 4 }
 0x172   : > { %v2983_v39 = vpop.permute.xlu1 %2982  ;;  %v2973_v40 = vpop.permute.xlu0 %2972 }
 0x173   : > { %v2985_v41 = vunpack.i.h.bf16 %v2983_v39  ;;  %v2984_v42 = vunpack.i.l.bf16 %v2983_v39  ;;  %v2975_v43 = vunpack.i.h.bf16 %v2973_v40  ;;  %v2974_v44 = vunpack.i.l.bf16 %v2973_v40 }
 0x175   : > { %v1151_v45 = vrot.slane %v2985_v41, 4  ;;  %v1095_v46 = vrot.slane %v2984_v42, 4  ;;  %v1153_v47 = vrot.slane %v2975_v43, 4  ;;  %v1097_v48 = vrot.slane %v2974_v44, 4 }
 0x177   : > { %v1152_v54 = vsel %vm949_vm0, %v1151_v45, %v2975_v43  ;;  %v1154_v55 = vsel %vm949_vm0, %v2985_v41, %v1153_v47  ;;  %v1096_v56 = vsel %vm949_vm0, %v1095_v46, %v2974_v44  ;;  %v1098_v57 = vsel %vm949_vm0, %v2984_v42, %v1097_v48 }
 0x178   : > { %v1158_v58 = vperm.slane %v1152_v54, %v3639_v36  ;;  %v1162_v59 = vperm.slane %v1154_v55, %v3639_v36  ;;  %v1102_v60 = vperm.slane %v1096_v56, %v3639_v36  ;;  %v1106_v2 = vperm.slane %v1098_v57, %v3639_v36 }
 0x17a   : > { %v2978_v4 = vpop.permute.xlu0 %2977  ;;  %v940_v5 = vpop.permute.xlu1 %939  ;;  %v1163_v10 = vrot.slane %v1158_v58, 4  ;;  %v1175_v11 = vrot.slane %v1162_v59, 4  ;;  %v1107_v12 = vrot.slane %v1102_v60, 4  ;;  %v1119_v18 = vrot.slane %v1106_v2, 4 }
 0x17b   : > { %v2980_v6 = vunpack.i.h.bf16 %v2978_v4  ;;  %v2979_v7 = vunpack.i.l.bf16 %v2978_v4  ;;  %v962_v8 = vsel %vm949_vm0, %v961_v61, %v940_v5  ;;  %v963_v9 = vrot.slane %v940_v5, 4 }
 0x17c   : > { %v968_v13 = vperm.slane %v962_v8, %v3639_v36 }
 0x17d   : > { %v1139_v14 = vrot.slane %v2980_v6, 4  ;;  %v1142_v15 = vsel %vm949_vm0, %v2980_v6, %v1141_v62  ;;  %v1083_v16 = vrot.slane %v2979_v7, 4  ;;  %v1086_v17 = vsel %vm949_vm0, %v2979_v7, %v1085_v63 }
 0x17e   : > { %v1150_v19 = vperm.slane %v1142_v15, %v3639_v36  ;;  %v1094_v21 = vperm.slane %v1086_v17, %v3639_v36  ;;  %v964_v22 = vsel %vm949_vm0, %v946_v51, %v963_v9  ;;  %v973_v26 = vrot.slane %v968_v13, 4 }
 0x17f   : > { %v1140_v23 = vsel %vm949_vm0, %v1139_v14, %v3630_v29  ;;  %v1084_v24 = vsel %vm949_vm0, %v1083_v16, %v3628_v28  ;;  %v972_v25 = vperm.slane %v964_v22, %v3639_v36  ;;  %v976_v29 = vsel %vm949_vm0, %v968_v13, %v975_v0 }
 0x180   : > { %v1146_v27 = vperm.slane %v1140_v23, %v3639_v36  ;;  %v1177_v30 = vrot.slane %v1150_v19, 4  ;;  %v1090_v31 = vperm.slane %v1084_v24, %v3639_v36  ;;  %v1120_v32 = vsel %vm949_vm0, %v1119_v18, %v1094_v21  ;;  %v2788_v24 = vld [vmem:[%s4252_s12 + $0x38] sm:$0xff] }
 0x181   : > { %v1121_v33 = vrot.slane %v1094_v21, 4  ;;  %v1126_v34 = vperm.slane %v1120_v32, %v3661_v3  ;;  %v1176_v35 = vsel %vm949_vm0, %v1175_v11, %v1150_v19  ;;  %v974_v53 = vsel %vm949_vm0, %v973_v26, %v3644_v49  ;;  %924 = vmatpush.bf16.msra.mxu2 %v2788_v24 }
 0x182   : > { %v1165_v37 = vrot.slane %v1146_v27, 4  ;;  %v1108_v28 = vsel %vm949_vm0, %v1107_v12, %v1090_v31  ;;  %v1109_v38 = vrot.slane %v1090_v31, 4  ;;  %v1164_v39 = vsel %vm949_vm0, %v1163_v10, %v1146_v27 }
 0x183   : > { %v1114_v40 = vperm.slane %v1108_v28, %v3661_v3  ;;  %v1122_v41 = vsel %vm949_vm0, %v1106_v2, %v1121_v33  ;;  %v1135_v42 = vrot.slane %v1126_v34, 4  ;;  %v1170_v43 = vperm.slane %v1164_v39, %v3661_v3 }
 0x184   : > { %v1110_v44 = vsel %vm949_vm0, %v1102_v60, %v1109_v38  ;;  %v1130_v45 = vperm.slane %v1122_v41, %v3661_v3  ;;  %v1166_v46 = vsel %vm949_vm0, %v1158_v58, %v1165_v37  ;;  %v1178_v47 = vsel %vm949_vm0, %v1162_v59, %v1177_v30 }
 0x185   : > { %v1118_v48 = vperm.slane %v1110_v44, %v3661_v3  ;;  %v1131_v51 = vrot.slane %v1114_v40, 4  ;;  %v1174_v52 = vperm.slane %v1166_v46, %v3661_v3  ;;  %v1182_v55 = vperm.slane %v1176_v35, %v3661_v3 }
 0x186   : > { %v1137_v54 = vrot.slane %v1130_v45, 4  ;;  %v1186_v56 = vperm.slane %v1178_v47, %v3661_v3  ;;  %v1187_v57 = vrot.slane %v1170_v43, 4  ;;  %v1136_v58 = vsel %vm949_vm0, 0.0, %v1135_v42 }
 0x187   : > { %v1132_v60 = vsel %vm949_vm0, 0.0, %v1131_v51  ;;  %v1133_v61 = vrot.slane %v1118_v48, 4  ;;  %v1189_v59 = vrot.slane %v1174_v52, 4  ;;  %v1191_v63 = vrot.slane %v1182_v55, 4 }
 0x188   : > { %v1138_v62 = vsel %vm949_vm0, 0.0, %v1137_v54  ;;  %v1193_v0 = vrot.slane %v1186_v56, 4  ;;  %v980_v2 = vperm.slane %v974_v53, %v3661_v3  ;;  %v1188_v4 = vsel %vm949_vm0, 0.0, %v1187_v57 }
 0x189   : > { %v1134_v49 = vsel %vm949_vm0, 0.0, %v1133_v61  ;;  %v1190_v5 = vsel %vm949_vm0, 0.0, %v1189_v59  ;;  %v1211_v6 = vrot.slane %v1138_v62, 4  ;;  %v1192_v7 = vsel %vm949_vm0, 0.0, %v1191_v63 }
 0x18a   : > { %v1194_v8 = vsel %vm949_vm0, 0.0, %v1193_v0  ;;  %v1200_v9 = vrot.slane %v1134_v49, 4  ;;  %v1206_v10 = vsel %vm949_vm0, %v1137_v54, %v1126_v34  ;;  %v1254_v12 = vrot.slane %v1190_v5, 4  ;;  %v2785_v5 = vld [vmem:[%s4252_s12 + $0x20] sm:$0xff] }
 0x18b   : > { %v1212_v11 = vsel %vm949_vm0, %v1211_v6, %v1136_v58  ;;  %v1265_v13 = vrot.slane %v1194_v8, 4  ;;  %v984_v14 = vperm.slane %v976_v29, %v3661_v3  ;;  %v985_v15 = vrot.slane %v972_v25, 4 }
 0x18c   : > { %v988_v16 = vsel %vm949_vm0, %v972_v25, %v987_v1  ;;  %v997_v17 = vrot.slane %v980_v2, 4  ;;  %v1195_v18 = vsel %vm949_vm0, %v1133_v61, %v1114_v40  ;;  %v1260_v19 = vsel %vm949_vm0, %v1193_v0, %v1182_v55 }
 0x18d   : > { %v1266_v21 = vsel %vm949_vm0, %v1265_v13, %v1192_v7  ;;  %v996_v22 = vperm.slane %v988_v16, %v3661_v3  ;;  %v999_v23 = vrot.slane %v984_v14, 4  ;;  %v986_v26 = vsel %vm949_vm0, %v985_v15, %v3647_v50  ;;  %v2787_v50 = vld [vmem:[%s4252_s12 + $0x30] sm:$0xff] }
 0x18e   : > { %v998_v27 = vsel %vm949_vm0, 0.0, %v997_v17  ;;  %v1199_v1 = vperm.slane %v1195_v18, %v3639_v36  ;;  %v1201_v25 = vsel %vm949_vm0, %v1200_v9, %v1132_v60  ;;  %v3724_v30 = vperm.slane %v986_v26, %v3661_v3  ;;  %925 = vmatpush.bf16.msra.mxu2 %v2787_v50 }
 0x18f   : > { %v1000_v31 = vsel %vm949_vm0, 0.0, %v999_v23  ;;  %v3727_v32 = vrot.slane %v996_v22, 4  ;;  %v1210_v33 = vperm.slane %v1206_v10, %v3639_v36  ;;  %v3734_v34 = vsel %vm949_vm0, %v999_v23, %v980_v2 }
 0x190   : > { %v1010_v35 = vrot.slane %v1000_v31, 4  ;;  %v1205_v29 = vperm.slane %v1201_v25, %v3639_v36  ;;  %v1216_v37 = vperm.slane %v1212_v11, %v3639_v36  ;;  %v1001_v28 = vrot.slane %v3724_v30, 4 }
 0x191   : > { %v3741_v38 = vsel %vm949_vm0, 0.0, %v3727_v32  ;;  %v1249_v39 = vsel %vm949_vm0, %v1189_v59, %v1170_v43  ;;  %v1255_v40 = vsel %vm949_vm0, %v1254_v12, %v1188_v4  ;;  %v1219_v44 = vrot.slane %v1199_v1, 4  ;;  %v2786_v43 = vld [vmem:[%s4252_s12 + $0x28] sm:$0xff] }
 0x192   : > { %v1011_v41 = vsel %vm949_vm0, %v1010_v35, %v998_v27  ;;  %v1217_v42 = vrot.slane %v1205_v29, 4  ;;  %v1229_v45 = vrot.slane %v1216_v37, 4  ;;  %v1021_v46 = vrot.slane %v3741_v38, 4  ;;  %926 = vmatpush.bf16.msra.mxu2 %v2786_v43 }
 0x193   : > { %v1253_v47 = vperm.slane %v1249_v39, %v3639_v36  ;;  %v1259_v48 = vperm.slane %v1255_v40, %v3639_v36  ;;  %v1264_v51 = vperm.slane %v1260_v19, %v3639_v36  ;;  %v1002_v52 = vsel %vm949_vm0, 0.0, %v1001_v28 }
 0x194   : > { %v1218_v53 = vsel %vm949_vm0, %v1217_v42, %v1199_v1  ;;  %v1230_v54 = vsel %vm949_vm0, %v1229_v45, %v1210_v33  ;;  %v1270_v55 = vperm.slane %v1266_v21, %v3639_v36  ;;  %v1220_v59 = vsel %vm949_vm0, %v1205_v29, %v1219_v44  ;;  %v2783_v44 = vld [vmem:[%s4252_s12 + $0x10] sm:$0xff] }
 0x195   : > { %v1224_v56 = vperm.slane %v1218_v53, %v3661_v3  ;;  %v1236_v57 = vperm.slane %v1230_v54, %v3661_v3  ;;  %v1271_v60 = vrot.slane %v1259_v48, 4  ;;  %v1273_v61 = vrot.slane %v1253_v47, 4 }
 0x196   : > { %v1283_v58 = vrot.slane %v1270_v55, 4  ;;  %v1231_v62 = vrot.slane %v1210_v33, 4  ;;  %v1285_v63 = vrot.slane %v1264_v51, 4  ;;  %v1228_v49 = vperm.slane %v1220_v59, %v3661_v3  ;;  %927 = vmatpush.bf16.msra.mxu2 %v2785_v5  ;;  %v2784_v33 = vld [vmem:[%s4252_s12 + $0x18] sm:$0xff] }
 0x197   : > { %v1241_v0 = vrot.slane %v1236_v57, 4  ;;  %v1272_v2 = vsel %vm949_vm0, %v1271_v60, %v1253_v47  ;;  %v1274_v4 = vsel %vm949_vm0, %v1259_v48, %v1273_v61  ;;  %v1243_v17 = vrot.slane %v1224_v56, 4 }
 0x198   : > { %v1278_v6 = vperm.slane %v1272_v2, %v3661_v3  ;;  %v1284_v7 = vsel %vm949_vm0, %v1283_v58, %v1264_v51  ;;  %v1232_v8 = vsel %vm949_vm0, %v1216_v37, %v1231_v62  ;;  %v3770_v9 = vperm.slane %v1274_v4, %v3661_v3 }
 0x199   : > { %v1242_v10 = vsel %vm949_vm0, %v1241_v0, %v1224_v56  ;;  %v1290_v11 = vperm.slane %v1284_v7, %v3661_v3  ;;  %v1240_v12 = vperm.slane %v1232_v8, %v3661_v3  ;;  %v1247_v13 = vrot.slane %v1228_v49, 4 }
 0x19a   : > { %v1303_v14 = vpack.c.bf16 %v1242_v10, %v1242_v10  ;;  %v1286_v15 = vsel %vm949_vm0, %v1270_v55, %v1285_v63  ;;  %v1301_v16 = vrot.slane %v3770_v9, 4  ;;  %v1244_v24 = vsel %vm949_vm0, %v1236_v57, %v1243_v17  ;;  %928 = vmatpush.bf16.msra.mxu2 %v2784_v33  ;;  %v2781_v10 = vld [vmem:[%s4252_s12] sm:$0xff] }
 0x19b   : > { %v1295_v18 = vrot.slane %v1290_v11, 4  ;;  %v1248_v19 = vsel %vm949_vm0, %v1240_v12, %v1247_v13  ;;  %v1294_v21 = vperm.slane %v1286_v15, %v3661_v3  ;;  %v1245_v22 = vrot.slane %v1240_v12, 4 }
 0x19c   : > { %v1309_v23 = vpack.c.bf16 %v1248_v19, %v1248_v19  ;;  %v1297_v26 = vrot.slane %v1278_v6, 4  ;;  %v1561_v1 = vunpack.c.l.b16 %v1303_v14  ;;  %v1305_v31 = vpack.c.bf16 %v1244_v24, %v1244_v24 }
 0x19d   : > { %v1296_v27 = vsel %vm949_vm0, %v1295_v18, %v1278_v6  ;;  %v1302_v25 = vsel %vm949_vm0, %v1294_v21, %v1301_v16  ;;  %v1009_v40 = vperm.slane %v3734_v34, %v3639_v36  ;;  %v1015_v42 = vperm.slane %v1011_v41, %v3639_v36 }
 0x19e   : > { %v1304_v50 = vpack.c.bf16 %v1296_v27, %v1296_v27  ;;  %v1310_v35 = vpack.c.bf16 %v1302_v25, %v1302_v25  ;;  %v1634_v29 = vunpack.c.l.b16 %v1309_v23  ;;  %v1298_v37 = vsel %vm949_vm0, %v1290_v11, %v1297_v26  ;;  %929 = vmatpush.bf16.msra.mxu2 %v2783_v44 }
 0x19f   : > { %v1306_v28 = vpack.c.bf16 %v1298_v37, %v1298_v37  ;;  %v1586_v39 = vunpack.c.l.b16 %v1305_v31  ;;  %v1016_v48 = vsel %vm949_vm0, %v3727_v32, %v3724_v30  ;;  %v1022_v51 = vsel %vm949_vm0, %v1021_v46, %v1002_v52  ;;  %v2782_v30 = vld [vmem:[%s4252_s12 + $0x8] sm:$0xff] }
 0x1a0   : > { %v1562_v45 = vunpack.c.l.b16 %v1304_v50  ;;  %v1635_v47 = vunpack.c.l.b16 %v1310_v35  ;;  %v1020_v34 = vperm.slane %v1016_v48, %v3639_v36  ;;  %v1026_v41 = vperm.slane %v1022_v51, %v3639_v36 }
 0x1a1   : > { %v1587_v43 = vunpack.c.l.b16 %v1306_v28  ;;  %v1027_v53 = vrot.slane %v1015_v42, 4  ;;  %v1299_v55 = vrot.slane %v1294_v21, 4  ;;  %v1029_v57 = vrot.slane %v1009_v40, 4 }
 0x1a2   : > { %v1563_v54 = vpack.c.b16 %v1562_v45, %v1561_v1  ;;  %v1636_v56 = vpack.c.b16 %v1635_v47, %v1634_v29  ;;  %v1039_v61 = vrot.slane %v1026_v41, 4  ;;  %v1041_v58 = vrot.slane %v1020_v34, 4  ;;  %930 = vmatpush.bf16.msra.mxu2 %v2782_v30 }
 0x1a3   : > { %v1588_v60 = vpack.c.b16 %v1587_v43, %v1586_v39  ;;  %v1246_v59 = vsel %vm949_vm0, %v1245_v22, %v1228_v49  ;;  %v1028_v46 = vsel %vm949_vm0, %v1027_v53, %v1009_v40  ;;  %v1030_v52 = vsel %vm949_vm0, %v1015_v42, %v1029_v57  ;;  %v3003_v42 = vld [vmem:[#allocation7] ss:$0 sm:$0xff] }
 0x1a4   : > { %v1569_v32 = vsel %vm1564_vm1, %v1563_v54, 0  ;;  %v1641_v38 = vsel %vm1564_vm1, %v1636_v56, 0  ;;  %v1040_v63 = vsel %vm949_vm0, %v1039_v61, %v1020_v34  ;;  %v1038_v0 = vperm.slane %v1030_v52, %v3661_v3 }
 0x1a5   : > { %1578 = vmatpush.bf16.xpose.msra.mxu3 %v1569_v32  ;;  %1650 = vmatpush.bf16.xpose.msrb.mxu0 %v1641_v38  ;;  %v1593_v62 = vsel %vm1564_vm1, %v1588_v60, 0  ;;  %v1042_v2 = vsel %vm949_vm0, %v1026_v41, %v1041_v58  ;;  %v1046_v49 = vperm.slane %v1040_v63, %v3661_v3  ;;  %v1300_v5 = vsel %vm949_vm0, %v1299_v55, %v3770_v9 }
 0x1a6   : > { %v1050_v4 = vperm.slane %v1042_v2, %v3661_v3  ;;  %v1057_v6 = vrot.slane %v1038_v0, 4  ;;  %v1307_v7 = vpack.c.bf16 %v1246_v59, %v1246_v59  ;;  %v1308_v8 = vpack.c.bf16 %v1300_v5, %v1300_v5  ;;  %931 = vmatpush.bf16.msra.mxu2 %v2781_v10 }
 0x1a7   : > { %v1034_v11 = vperm.slane %v1028_v46, %v3661_v3  ;;  %v1051_v12 = vrot.slane %v1046_v49, 4 }
 0x1a8   : > { %v1058_v13 = vsel %vm949_vm0, %v1050_v4, %v1057_v6  ;;  %v1610_v14 = vunpack.c.l.b16 %v1307_v7  ;;  %v1611_v15 = vunpack.c.l.b16 %v1308_v8  ;;  %v1055_v24 = vrot.slane %v1050_v4, 4 }
 0x1a9   : > { %v1052_v16 = vsel %vm949_vm0, %v1051_v12, %v1034_v11  ;;  %v1062_v17 = vpack.c.bf16 %v1058_v13, %v1058_v13  ;;  %932 = vmatmul.bf16.vlgmr.msra.gmra.mxu2 %v3621_v20  ;;  %v1053_v21 = vrot.slane %v1034_v11, 4 }
 0x1aa   : > { %v1059_v18 = vpack.c.bf16 %v1052_v16, %v1052_v16  ;;  %v1612_v9 = vpack.c.b16 %v1611_v15, %v1610_v14  ;;  %v1056_v26 = vsel %vm949_vm0, %v1055_v24, %v1038_v0 }
 0x1ab   : > { %v1054_v22 = vsel %vm949_vm0, %v1046_v49, %v1053_v21  ;;  %v1061_v27 = vpack.c.bf16 %v1056_v26, %v1056_v26 }
 0x1ac   : > { %2609 = vmatmul.msk.bf16.vlgmr.msrb.gmra.mxu0 %vm1564_vm1, %v1062_v17  ;;  %2606 = vmatmul.msk.bf16.vlgmr.msra.gmra.mxu3 %vm1564_vm1, %v1059_v18  ;;  %v1617_v19 = vsel %vm1564_vm1, %v1612_v9, 0  ;;  %v1060_v23 = vpack.c.bf16 %v1054_v22, %v1054_v22 }
 0x1ad   : > { %1602 = vmatpush.bf16.xpose.msrb.mxu3 %v1593_v62 }
 0x1b5   : > { %1626 = vmatpush.bf16.xpose.msra.mxu3 %v1617_v19 }
 0x1bc   : > { %2607 = vmatmul.msk.bf16.vlgmr.msrb.gmra.mxu3 %vm1564_vm1, %v1060_v23 }
 0x1cc   : > { %2608 = vmatmul.msk.bf16.vlgmr.msra.gmra.mxu3 %vm1564_vm1, %v1061_v27 }
 0x229   : > { %v1652_v1 = vpop.f32.mrf.mxu0 }
 0x22a   : > { %v1659_v25 = vmul.f32 0.25, %v1652_v1 }
 0x22c   : > { %v1669_v31 = vsel %vm1564_vm1, %v1659_v25, -inf  ;;  %v933_v37 = vpop.f32.mrf.mxu2 }
 0x22d   : > { %1670 = vmax.xlane.f32.xlu2 %v1669_v31  ;;  %v934_v45 = vadd.f32 %v3003_v42, %v933_v37 }
 0x22f   : > { %v1580_v33 = vpop.f32.mrf.mxu3  ;;  %v1333_v15 = vrot.slane %v934_v45, 4 }
 0x230   : > { %v1656_v50 = vmul.f32 0.25, %v1580_v33 }
 0x231   : > { %v1654_v20 = vpop.f32.mrf.mxu0 }
 0x232   : > { %v1660_v35 = vsel %vm1564_vm1, %v1656_v50, -inf }
 0x234   : > { %v935_v44 = vpop.f32.mrf.mxu2 }
 0x235   : > { %1661 = vmax.xlane.f32.xlu2 %v1660_v35  ;;  %v936_v47 = vadd.f32 %v3003_v42, %v935_v44 }
 0x237   : > { %v1582_v29 = vpop.f32.mrf.mxu3  ;;  %v2996_v51 = vpack.i.bf16 %v936_v47, %v934_v45  ;;  %v1389_v13 = vrot.slane %v936_v47, 4 }
 0x23f   : > { %v1604_v28 = vpop.f32.mrf.mxu3 }
 0x240   : > { %v1657_v39 = vmul.f32 0.25, %v1604_v28 }
 0x242   : > { %v1663_v40 = vsel %vm1564_vm1, %v1657_v39, -inf }
 0x243   : > { %1664 = vmax.xlane.f32.xlu1 %v1663_v40 }
 0x247   : > { %v1606_v48 = vpop.f32.mrf.mxu3 }
 0x24d   : > { %2997 = vrot.lane.b32.xlu2 %v2996_v51, %s3293_s15  ;;  %s3298_s15 = smov 48  }
 0x24f   : > { %v1628_v43 = vpop.f32.mrf.mxu3 }
 0x250   : > { %v1658_v34 = vmul.f32 0.25, %v1628_v43 }
 0x252   : > { %v1666_v41 = vsel %vm1564_vm1, %v1658_v34, -inf }
 0x253   : > { %1667 = vmax.xlane.f32.xlu0 %v1666_v41 }
 0x257   : > { %v1630_v53 = vpop.f32.mrf.mxu3 }
 0x25c   : > { %2992 = vrot.lane.b32.xlu1 %v2996_v51, %s3292_s23  ;;  %s3297_s23 = smov 32  }
 0x267   : > { %2987 = vrot.lane.b32.xlu0 %v2996_v51, %s3294_s10  ;;  %s3299_s10 = smov 16  }
 0x2a0   : > { %v1671_v54 = vpop.xlane.xlu2 %1670 }
 0x2a1   : > { %v1675_v62 = vsub.f32 %v1659_v25, %v1671_v54 }
 0x2a3   : > { %v1682_v0 = vmul.f32 1.442695, %v1675_v62 }
 0x2a8   : > { %v1662_v55 = vpop.xlane.xlu2 %1661 }
 0x2a9   : > { %v1672_v56 = vsub.f32 %v1656_v50, %v1662_v55 }
 0x2ab   : > { %v1676_v57 = vmul.f32 1.442695, %v1672_v56 }
 0x2ad   : > { %3010 = vpow2.f32 %v1676_v57 }
 0x2b0   : > { %v2998_v6 = vpop.permute.xlu2 %2997 }
 0x2b1   : > { %v3000_v11 = vunpack.i.h.bf16 %v2998_v6  ;;  %v2999_v12 = vunpack.i.l.bf16 %v2998_v6 }
 0x2b3   : > { %v3837_v60 = vpop.eup %3010  ;;  %v1399_v19 = vrot.slane %v3000_v11, 4  ;;  %v1343_v21 = vrot.slane %v2999_v12, 4 }
 0x2b4   : > { %v1684_v61 = vsel %vm1564_vm1, %v3837_v60, 0.0 }
 0x2b5   : > { %1685 = vadd.xlane.f32.xlu2 %v1684_v61 }
 0x2b6   : > { %v1665_v58 = vpop.xlane.xlu1 %1664 }
 0x2b7   : > { %v1673_v59 = vsub.f32 %v1657_v39, %v1665_v58 }
 0x2b9   : > { %v1678_v30 = vmul.f32 1.442695, %v1673_v59 }
 0x2bb   : > { %3012 = vpow2.f32 %v1678_v30 }
 0x2c1   : > { %v3841_v32 = vpop.eup %3012 }
 0x2c2   : > { %v1687_v38 = vsel %vm1564_vm1, %v3841_v32, 0.0 }
 0x2c3   : > { %1688 = vadd.xlane.f32.xlu1 %v1687_v38 }
 0x2c6   : > { %v1668_v46 = vpop.xlane.xlu0 %1667 }
 0x2c7   : > { %v1674_v52 = vsub.f32 %v1658_v34, %v1668_v46 }
 0x2c9   : > { %v1680_v63 = vmul.f32 1.442695, %v1674_v52 }
 0x2cb   : > { %3014 = vpow2.f32 %v1680_v63 }
 0x2cc   : > { %3016 = vpow2.f32 %v1682_v0 }
 0x2ce   : > { %v2993_v2 = vpop.permute.xlu1 %2992 }
 0x2cf   : > { %v2995_v49 = vunpack.i.h.bf16 %v2993_v2  ;;  %v2994_v4 = vunpack.i.l.bf16 %v2993_v2 }
 0x2d1   : > { %v3845_v5 = vpop.eup %3014  ;;  %v1387_v7 = vrot.slane %v2995_v49, 4  ;;  %v1331_v10 = vrot.slane %v2994_v4, 4  ;;  %v1390_v17 = vsel %vm949_vm0, %v2995_v49, %v1389_v13  ;;  %v1334_v9 = vsel %vm949_vm0, %v2994_v4, %v1333_v15 }
 0x2d2   : > { %v1690_v8 = vsel %vm1564_vm1, %v3845_v5, 0.0  ;;  %v3849_v14 = vpop.eup %3016  ;;  %v1398_v26 = vperm.slane %v1390_v17, %v3639_v36  ;;  %v1342_v31 = vperm.slane %v1334_v9, %v3639_v36 }
 0x2d3   : > { %1691 = vadd.xlane.f32.xlu0 %v1690_v8  ;;  %v1388_v16 = vsel %vm949_vm0, %v1387_v7, %v936_v47  ;;  %v1332_v18 = vsel %vm949_vm0, %v1331_v10, %v934_v45  ;;  %v1693_v24 = vsel %vm1564_vm1, %v3849_v14, 0.0 }
 0x2d4   : > { %v1394_v22 = vperm.slane %v1388_v16, %v3639_v36  ;;  %v1338_v27 = vperm.slane %v1332_v18, %v3639_v36  ;;  %v1425_v39 = vrot.slane %v1398_v26, 4  ;;  %v1369_v43 = vrot.slane %v1342_v31, 4 }
 0x2d6   : > { %v1413_v29 = vrot.slane %v1394_v22, 4  ;;  %v1357_v40 = vrot.slane %v1338_v27, 4 }
 0x2d9   : > { %v2988_v23 = vpop.permute.xlu0 %2987 }
 0x2da   : > { %v2990_v1 = vunpack.i.h.bf16 %v2988_v23  ;;  %v2989_v25 = vunpack.i.l.bf16 %v2988_v23 }
 0x2db   : > { %1694 = vadd.xlane.f32.xlu0 %v1693_v24 }
 0x2dc   : > { %v1400_v33 = vsel %vm949_vm0, %v1399_v19, %v2990_v1  ;;  %v1401_v50 = vrot.slane %v2990_v1, 4  ;;  %v1344_v20 = vsel %vm949_vm0, %v1343_v21, %v2989_v25  ;;  %v1345_v35 = vrot.slane %v2989_v25, 4 }
 0x2dd   : > { %v1406_v37 = vperm.slane %v1400_v33, %v3639_v36  ;;  %v1350_v28 = vperm.slane %v1344_v20, %v3639_v36 }
 0x2de   : > { %v1402_v42 = vsel %vm949_vm0, %v3000_v11, %v1401_v50  ;;  %v1346_v44 = vsel %vm949_vm0, %v2999_v12, %v1345_v35 }
 0x2df   : > { %v1410_v45 = vperm.slane %v1402_v42, %v3639_v36  ;;  %v1411_v47 = vrot.slane %v1406_v37, 4  ;;  %v1414_v48 = vsel %vm949_vm0, %v1406_v37, %v1413_v29  ;;  %v1354_v51 = vperm.slane %v1346_v44, %v3639_v36 }
 0x2e0   : > { %v1422_v34 = vperm.slane %v1414_v48, %v3661_v3  ;;  %v1355_v41 = vrot.slane %v1350_v28, 4  ;;  %v1358_v53 = vsel %vm949_vm0, %v1350_v28, %v1357_v40 }
 0x2e1   : > { %v1412_v54 = vsel %vm949_vm0, %v1411_v47, %v1394_v22  ;;  %v1423_v55 = vrot.slane %v1410_v45, 4  ;;  %v1426_v56 = vsel %vm949_vm0, %v1410_v45, %v1425_v39  ;;  %v1366_v57 = vperm.slane %v1358_v53, %v3661_v3 }
 0x2e2   : > { %v1418_v61 = vperm.slane %v1412_v54, %v3661_v3  ;;  %v1434_v58 = vperm.slane %v1426_v56, %v3661_v3  ;;  %v1437_v59 = vrot.slane %v1422_v34, 4  ;;  %v1356_v30 = vsel %vm949_vm0, %v1355_v41, %v1338_v27 }
 0x2e3   : > { %v1424_v38 = vsel %vm949_vm0, %v1423_v55, %v1398_v26  ;;  %v1362_v46 = vperm.slane %v1356_v30, %v3661_v3  ;;  %v1367_v52 = vrot.slane %v1354_v51, 4  ;;  %v1370_v62 = vsel %vm949_vm0, %v1354_v51, %v1369_v43 }
 0x2e4   : > { %v1430_v63 = vperm.slane %v1424_v38, %v3661_v3  ;;  %v1435_v0 = vrot.slane %v1418_v61, 4  ;;  %v1438_v2 = vsel %vm949_vm0, 0.0, %v1437_v59  ;;  %v1441_v49 = vrot.slane %v1434_v58, 4 }
 0x2e5   : > { %v1497_v4 = vsel %vm949_vm0, %v1437_v59, %v1418_v61  ;;  %v1502_v6 = vrot.slane %v1438_v2, 4  ;;  %v1368_v7 = vsel %vm949_vm0, %v1367_v52, %v1342_v31  ;;  %v1378_v8 = vperm.slane %v1370_v62, %v3661_v3 }
 0x2e6   : > { %v1436_v10 = vsel %vm949_vm0, 0.0, %v1435_v0  ;;  %v1439_v11 = vrot.slane %v1430_v63, 4  ;;  %v1442_v12 = vsel %vm949_vm0, 0.0, %v1441_v49  ;;  %v1501_v13 = vperm.slane %v1497_v4, %v3639_v36 }
 0x2e7   : > { %v1503_v15 = vsel %vm949_vm0, %v1502_v6, %v1436_v10  ;;  %v1508_v16 = vsel %vm949_vm0, %v1441_v49, %v1430_v63  ;;  %v1513_v17 = vrot.slane %v1442_v12, 4  ;;  %v1374_v18 = vperm.slane %v1368_v7, %v3661_v3 }
 0x2e8   : > { %v1440_v9 = vsel %vm949_vm0, 0.0, %v1439_v11  ;;  %v1507_v19 = vperm.slane %v1503_v15, %v3639_v36  ;;  %v1512_v21 = vperm.slane %v1508_v16, %v3639_v36  ;;  %v1521_v22 = vrot.slane %v1501_v13, 4 }
 0x2e9   : > { %v1379_v23 = vrot.slane %v1362_v46, 4  ;;  %v1381_v24 = vrot.slane %v1366_v57, 4  ;;  %v1383_v26 = vrot.slane %v1374_v18, 4  ;;  %v1385_v27 = vrot.slane %v1378_v8, 4 }
 0x2ea   : > { %v1514_v1 = vsel %vm949_vm0, %v1513_v17, %v1440_v9  ;;  %v1522_v25 = vsel %vm949_vm0, %v1507_v19, %v1521_v22  ;;  %v1533_v31 = vrot.slane %v1512_v21, 4  ;;  %v1519_v33 = vrot.slane %v1507_v19, 4 }
 0x2eb   : > { %v1380_v50 = vsel %vm949_vm0, 0.0, %v1379_v23  ;;  %v1382_v20 = vsel %vm949_vm0, 0.0, %v1381_v24  ;;  %v1384_v35 = vsel %vm949_vm0, 0.0, %v1383_v26  ;;  %v1386_v29 = vsel %vm949_vm0, 0.0, %v1385_v27 }
 0x2ec   : > { %v1443_v37 = vsel %vm949_vm0, %v1381_v24, %v1362_v46  ;;  %v1448_v28 = vrot.slane %v1382_v20, 4  ;;  %v1454_v39 = vsel %vm949_vm0, %v1385_v27, %v1374_v18  ;;  %v1459_v40 = vrot.slane %v1386_v29, 4 }
 0x2ed   : > { %v1447_v42 = vperm.slane %v1443_v37, %v3639_v36  ;;  %v1458_v44 = vperm.slane %v1454_v39, %v3639_v36  ;;  %v1518_v45 = vperm.slane %v1514_v1, %v3639_v36  ;;  %v1530_v47 = vperm.slane %v1522_v25, %v3661_v3 }
 0x2ee   : > { %v1449_v48 = vsel %vm949_vm0, %v1448_v28, %v1380_v50  ;;  %v1460_v51 = vsel %vm949_vm0, %v1459_v40, %v1384_v35  ;;  %v1520_v43 = vsel %vm949_vm0, %v1519_v33, %v1501_v13 }
 0x2ef   : > { %v1453_v34 = vperm.slane %v1449_v48, %v3639_v36  ;;  %v1467_v41 = vrot.slane %v1447_v42, 4  ;;  %v1464_v53 = vperm.slane %v1460_v51, %v3639_v36  ;;  %v1479_v54 = vrot.slane %v1458_v44, 4 }
 0x2f0   : > { %v1534_v55 = vsel %vm949_vm0, %v1518_v45, %v1533_v31  ;;  %v1549_v56 = vrot.slane %v1530_v47, 4  ;;  %v1526_v57 = vperm.slane %v1520_v43, %v3661_v3  ;;  %v1531_v61 = vrot.slane %v1518_v45, 4 }
 0x2f1   : > { %v1468_v58 = vsel %vm949_vm0, %v1453_v34, %v1467_v41  ;;  %v1480_v59 = vsel %vm949_vm0, %v1464_v53, %v1479_v54  ;;  %v1542_v30 = vperm.slane %v1534_v55, %v3661_v3  ;;  %v1465_v38 = vrot.slane %v1453_v34, 4 }
 0x2f2   : > { %v1476_v46 = vperm.slane %v1468_v58, %v3661_v3  ;;  %v1488_v52 = vperm.slane %v1480_v59, %v3661_v3  ;;  %v1477_v62 = vrot.slane %v1464_v53, 4  ;;  %v1532_v63 = vsel %vm949_vm0, %v1531_v61, %v1512_v21 }
 0x2f3   : > { %v1550_v0 = vsel %vm949_vm0, %v1542_v30, %v1549_v56  ;;  %v1466_v2 = vsel %vm949_vm0, %v1465_v38, %v1447_v42  ;;  %v1538_v49 = vperm.slane %v1532_v63, %v3661_v3  ;;  %v1545_v4 = vrot.slane %v1526_v57, 4 }
 0x2f4   : > { %v1495_v6 = vrot.slane %v1476_v46, 4  ;;  %v1558_v7 = vpack.c.bf16 %v1550_v0, %v1550_v0  ;;  %v1472_v8 = vperm.slane %v1466_v2, %v3661_v3  ;;  %v1478_v10 = vsel %vm949_vm0, %v1477_v62, %v1458_v44 }
 0x2f5   : > { %v1484_v11 = vperm.slane %v1478_v10, %v3661_v3  ;;  %v1546_v12 = vsel %vm949_vm0, %v1538_v49, %v1545_v4  ;;  %v1493_v13 = vrot.slane %v1488_v52, 4  ;;  %v1547_v15 = vrot.slane %v1542_v30, 4 }
 0x2f6   : > { %v1496_v16 = vsel %vm949_vm0, %v1488_v52, %v1495_v6  ;;  %v1777_v17 = vunpack.c.l.b16 %v1558_v7  ;;  %v1491_v18 = vrot.slane %v1472_v8, 4  ;;  %v1554_v9 = vpack.c.bf16 %v1546_v12, %v1546_v12 }
 0x2f7   : > { %v1557_v19 = vpack.c.bf16 %v1496_v16, %v1496_v16  ;;  %v1494_v21 = vsel %vm949_vm0, %v1493_v13, %v1476_v46  ;;  %v1548_v22 = vsel %vm949_vm0, %v1547_v15, %v1530_v47  ;;  %v1489_v23 = vrot.slane %v1484_v11, 4 }
 0x2f8   : > { %v1492_v24 = vsel %vm949_vm0, %v1484_v11, %v1491_v18  ;;  %v1733_v26 = vunpack.c.l.b16 %v1554_v9  ;;  %v1555_v27 = vpack.c.bf16 %v1494_v21, %v1494_v21  ;;  %v1556_v1 = vpack.c.bf16 %v1548_v22, %v1548_v22 }
 0x2f9   : > { %v1776_v25 = vunpack.c.l.b16 %v1557_v19  ;;  %v1553_v31 = vpack.c.bf16 %v1492_v24, %v1492_v24  ;;  %v1490_v33 = vsel %vm949_vm0, %v1489_v23, %v1472_v8  ;;  %v1543_v50 = vrot.slane %v1538_v49, 4 }
 0x2fa   : > { %v1754_v20 = vunpack.c.l.b16 %v1555_v27  ;;  %v1755_v35 = vunpack.c.l.b16 %v1556_v1  ;;  %v1551_v29 = vpack.c.bf16 %v1490_v33, %v1490_v33 }
 0x2fb   : > { %v1778_v37 = vpack.c.b16 %v1777_v17, %v1776_v25  ;;  %v1732_v28 = vunpack.c.l.b16 %v1553_v31  ;;  %v1544_v39 = vsel %vm949_vm0, %v1543_v50, %v1526_v57 }
 0x2fc   : > { %v1756_v40 = vpack.c.b16 %v1755_v35, %v1754_v20  ;;  %v1552_v42 = vpack.c.bf16 %v1544_v39, %v1544_v39  ;;  %v1710_v44 = vunpack.c.l.b16 %v1551_v29 }
 0x2fd   : > { %1790 = vmatpush.bf16.msra.mxu0 %v1778_v37  ;;  %v1734_v45 = vpack.c.b16 %v1733_v26, %v1732_v28 }
 0x2fe   : > { %1768 = vmatpush.bf16.msrb.mxu3 %v1756_v40  ;;  %v1711_v47 = vunpack.c.l.b16 %v1552_v42 }
 0x2ff   : > { %1746 = vmatpush.bf16.msrb.mxu2 %v1734_v45 }
 0x300   : > { %v1712_v48 = vpack.c.b16 %v1711_v47, %v1710_v44 }
 0x302   : > { %1724 = vmatpush.bf16.msrb.mxu1 %v1712_v48 }
 0x328   : > { %v1686_v51 = vpop.xlane.xlu2 %1685 }
 0x329   : > { %3018 = vrcp.f32 %v1686_v51 }
 0x32f   : > { %v3019_v43 = vpop.eup %3018 }
 0x330   : > { %v1700_v34 = vmul.f32 %v3019_v43, %v3837_v60 }
 0x332   : > { %v1704_v41 = vpack.c.bf16 %v1700_v34, %v1700_v34 }
 0x334   : > { %2610 = vmatmul.msk.bf16.vlgmr.msrb.gmra.mxu1 %vm1564_vm1, %v1704_v41 }
 0x336   : > { %v1689_v53 = vpop.xlane.xlu1 %1688 }
 0x337   : > { %3020 = vrcp.f32 %v1689_v53 }
 0x33d   : > { %v3021_v54 = vpop.eup %3020 }
 0x33e   : > { %v1701_v55 = vmul.f32 %v3021_v54, %v3841_v32 }
 0x340   : > { %v1705_v56 = vpack.c.bf16 %v1701_v55, %v1701_v55 }
 0x342   : > { %2611 = vmatmul.msk.bf16.vlgmr.msrb.gmra.mxu2 %vm1564_vm1, %v1705_v56 }
 0x346   : > { %v1692_v57 = vpop.xlane.xlu0 %1691 }
 0x347   : > { %3022 = vrcp.f32 %v1692_v57 }
 0x34d   : > { %v3023_v61 = vpop.eup %3022 }
 0x34e   : > { %v1702_v58 = vmul.f32 %v3023_v61, %v3845_v5  ;;  %v1695_v59 = vpop.xlane.xlu0 %1694 }
 0x34f   : > { %3024 = vrcp.f32 %v1695_v59 }
 0x350   : > { %v1706_v30 = vpack.c.bf16 %v1702_v58, %v1702_v58 }
 0x352   : > { %2612 = vmatmul.msk.bf16.vlgmr.msrb.gmra.mxu3 %vm1564_vm1, %v1706_v30 }
 0x355   : > { %v3025_v60 = vpop.eup %3024 }
 0x356   : > { %v1703_v38 = vmul.f32 %v3025_v60, %v3849_v14 }
 0x358   : > { %v1707_v46 = vpack.c.bf16 %v1703_v38, %v1703_v38 }
 0x35a   : > { %2613 = vmatmul.msk.bf16.vlgmr.msra.gmra.mxu0 %vm1564_vm1, %v1707_v46 }
 0x3b1   : > { %v1726_v32 = vpop.f32.mrf.mxu1 }
 0x3b2   : > { %v1798_v0 = vrot.slane %v1726_v32, 4 }
 0x3b9   : > { %v1728_v52 = vpop.f32.mrf.mxu1 }
 0x3c5   : > { %v1748_v62 = vpop.f32.mrf.mxu2 }
 0x3c6   : > { %v1810_v49 = vrot.slane %v1748_v62, 4 }
 0x3cd   : > { %v1750_v63 = vpop.f32.mrf.mxu2 }
 0x3d5   : > { %v1770_v2 = vpop.f32.mrf.mxu3 }
 0x3d6   : > { %v1796_v4 = vrot.slane %v1770_v2, 4  ;;  %v1799_v5 = vsel %vm949_vm0, %v1770_v2, %v1798_v0 }
 0x3d7   : > { %v1807_v6 = vperm.slane %v1799_v5, %v3639_v36  ;;  %v1792_v7 = vpop.f32.mrf.mxu0  ;;  %v2790_v5 = vld [vmem:[%s4253_s14 + $0x8] sm:$0xff] }
 0x3d8   : > { %v1797_v8 = vsel %vm949_vm0, %v1796_v4, %v1726_v32  ;;  %v1808_v10 = vrot.slane %v1792_v7, 4  ;;  %v1811_v14 = vsel %vm949_vm0, %v1792_v7, %v1810_v49  ;;  %v2792_v4 = vld [vmem:[%s4253_s14 + $0x18] sm:$0xff] }
 0x3d9   : > { %v1803_v11 = vperm.slane %v1797_v8, %v3639_v36  ;;  %v1834_v12 = vrot.slane %v1807_v6, 4  ;;  %v1819_v13 = vperm.slane %v1811_v14, %v3639_v36  ;;  %1968 = vmatpush.bf16.msra.mxu1 %v2792_v4 }
 0x3da   : > { %v1809_v15 = vsel %vm949_vm0, %v1808_v10, %v1748_v62 }
 0x3db   : > { %v1822_v16 = vrot.slane %v1803_v11, 4  ;;  %v1815_v17 = vperm.slane %v1809_v15, %v3639_v36  ;;  %v1832_v18 = vrot.slane %v1819_v13, 4  ;;  %v1835_v9 = vsel %vm949_vm0, %v1819_v13, %v1834_v12  ;;  %v3004_v15 = vld [vmem:[%s4254_s27] ss:$0 sm:$0xff] }
 0x3dc   : > { %v1843_v19 = vperm.slane %v1835_v9, %v3661_v3 }
 0x3dd   : > { %v1820_v21 = vrot.slane %v1815_v17, 4  ;;  %v1823_v22 = vsel %vm949_vm0, %v1815_v17, %v1822_v16  ;;  %v1833_v23 = vsel %vm949_vm0, %v1832_v18, %v1807_v6  ;;  %v1772_v24 = vpop.f32.mrf.mxu3  ;;  %v2789_v6 = vld [vmem:[%s4253_s14] sm:$0xff] }
 0x3de   : > { %v1831_v26 = vperm.slane %v1823_v22, %v3661_v3  ;;  %v1839_v27 = vperm.slane %v1833_v23, %v3661_v3  ;;  %v1850_v1 = vrot.slane %v1843_v19, 4  ;;  %v3032_v18 = vld [vmem:[%s3608_s21] sm:$0xff]  ;;  %v3300_v22 = vmov 64.0  }
 0x3df   : > { %v1821_v25 = vsel %vm949_vm0, %v1820_v21, %v1803_v11  ;;  %v1794_v31 = vpop.f32.mrf.mxu0  ;;  %3026 = vrcp.f32 %v3300_v22 }
 0x3e0   : > { %v1827_v33 = vperm.slane %v1821_v25, %v3661_v3  ;;  %v1846_v50 = vrot.slane %v1831_v26, 4  ;;  %v1848_v20 = vrot.slane %v1839_v27, 4  ;;  %v1851_v35 = vsel %vm949_vm0, 0.0, %v1850_v1 }
 0x3e1   : > { %v1863_v29 = vsel %vm949_vm0, %v1850_v1, %v1839_v27  ;;  %v1868_v37 = vrot.slane %v1851_v35, 4 }
 0x3e2   : > { %v1844_v28 = vrot.slane %v1827_v33, 4  ;;  %v1847_v39 = vsel %vm949_vm0, 0.0, %v1846_v50  ;;  %v1849_v40 = vsel %vm949_vm0, 0.0, %v1848_v20  ;;  %v1867_v42 = vperm.slane %v1863_v29, %v3639_v36 }
 0x3e3   : > { %v1857_v44 = vrot.slane %v1847_v39, 4  ;;  %v1852_v45 = vsel %vm949_vm0, %v1846_v50, %v1827_v33  ;;  %v1869_v47 = vsel %vm949_vm0, %v1868_v37, %v1849_v40 }
 0x3e4   : > { %v1845_v48 = vsel %vm949_vm0, 0.0, %v1844_v28  ;;  %v1856_v51 = vperm.slane %v1852_v45, %v3639_v36  ;;  %v1873_v43 = vperm.slane %v1869_v47, %v3639_v36  ;;  %v1888_v34 = vrot.slane %v1867_v42, 4 }
 0x3e5   : > { %v1858_v41 = vsel %vm949_vm0, %v1857_v44, %v1845_v48  ;;  %v3027_v23 = vpop.eup %3026 }
 0x3e6   : > { %v1862_v53 = vperm.slane %v1858_v41, %v3639_v36  ;;  %v1876_v54 = vrot.slane %v1856_v51, 4  ;;  %v1889_v55 = vsel %vm949_vm0, %v1873_v43, %v1888_v34  ;;  %v1886_v56 = vrot.slane %v1873_v43, 4 }
 0x3e7   : > { %v1897_v57 = vperm.slane %v1889_v55, %v3661_v3  ;;  %v1983_v24 = vmul.f32 64.0, %v3027_v23  ;;  %vm1987_vm5 = vweird.f32 %v3027_v23 }
 0x3e8   : > { %v1877_v61 = vsel %vm949_vm0, %v1862_v53, %v1876_v54  ;;  %v1874_v58 = vrot.slane %v1862_v53, 4  ;;  %v1887_v59 = vsel %vm949_vm0, %v1886_v56, %v1867_v42 }
 0x3e9   : > { %v1885_v30 = vperm.slane %v1877_v61, %v3661_v3  ;;  %v1902_v60 = vrot.slane %v1897_v57, 4  ;;  %v1893_v38 = vperm.slane %v1887_v59, %v3661_v3  ;;  %v1984_v26 = vsub.f32 1.0, %v1983_v24 }
 0x3ea   : > { %v1875_v46 = vsel %vm949_vm0, %v1874_v58, %v1856_v51 }
 0x3eb   : > { %v1903_v36 = vsel %vm949_vm0, %v1902_v60, %v1885_v30  ;;  %v1904_v32 = vrot.slane %v1885_v30, 4  ;;  %v1881_v52 = vperm.slane %v1875_v46, %v3661_v3  ;;  %v1898_v62 = vrot.slane %v1893_v38, 4  ;;  %v2791_v3 = vld [vmem:[%s4253_s14 + $0x10] sm:$0xff] }
 0x3ec   : > { %1911 = vrot.lane.b32.xlu0 %v1903_v36, %s3297_s23  ;;  %1969 = vmatpush.bf16.msra.mxu1 %v2791_v3  ;;  %v1985_v31 = vmul.f32 %v3027_v23, %v1984_v26  ;;  %s4260_s23 = sld [smem:[#allocation16_spill]] }
 0x3ed   : > { %v1905_v63 = vsel %vm949_vm0, %v1897_v57, %v1904_v32  ;;  %v1900_v0 = vrot.slane %v1881_v52, 4  ;;  %v1899_v2 = vsel %vm949_vm0, %v1898_v62, %v1881_v52 }
 0x3ee   : > { %1915 = vrot.lane.b32.xlu2 %v1905_v63, %s3298_s15  ;;  %s4255_s15 = sld [smem:[#allocation30_spill]]  ;;  %v1986_v28 = vadd.f32 %v3027_v23, %v1985_v31 }
 0x3ef   : > { %v1901_v49 = vsel %vm949_vm0, %v1893_v38, %v1900_v0 }
 0x3f0   : > { %1907 = vrot.lane.b32.xlu1 %v1901_v49, %s3299_s10  ;;  %1970 = vmatpush.bf16.msra.mxu1 %v2790_v5  ;;  %v4036_v48 = vsel %vm1987_vm5, %v3027_v23, %v1986_v28  ;;  %v2816_v49 = vld [vmem:[#allocation8 + $0x38] sm:$0xff]  ;;  %v2811_v28 = vld [vmem:[#allocation8 + $0x10] sm:$0xff]  ;;  %s2760_s10 = sshll.u32 %s3271_s20, 1 }
 0x3f1   : > { %v2824_v5 = vld [vmem:[#allocation8 + $0x78] sm:$0xff]  ;;  %2283 = vmatpush.bf16.msrb.mxu0 %v2816_v49  ;;  %s2355_s6 = sadd.s32 %s3267_s1, %s2760_s10 }
 0x3f2   : > { %s676_s21 = sand.u32 1, %s4260_s23   ;;  %s4265_s23 = sld [smem:[#allocation37_spill]] }
 0x3f3   : > { %s2507_s8 = sshll.u32 %s676_s21, 3  ;;  %s2345_s24 = scalar_lea.sflag [#allocation4], %s676_s21 }
 0x3f4   : > { %1971 = vmatpush.bf16.msra.mxu1 %v2789_v6  ;;  %v2689_v27 = vld [vmem:[%s4255_s15 + $0x70] sm:$0xf]  ;;  %v2808_v1 = vld [vmem:[%s4255_s15 + $0x74] sm:$0xf0]  ;;  %v2807_v25 = vld [vmem:[%s4255_s15 + $0x74] sm:$0xf] }
 0x3f5   : > { %v2690_v33 = vor.u32 %v2808_v1, %v2689_v27  ;;  %v2691_v50 = vld [vmem:[%s4255_s15 + $0x78] sm:$0xf0]  ;;  %v2681_v35 = vld [vmem:[%s4255_s15 + $0x60] sm:$0xf]  ;;  %v2806_v29 = vld [vmem:[%s4255_s15 + $0x64] sm:$0xf0] }
 0x3f6   : > { %v2694_v20 = vor.u32 %v2807_v25, %v2691_v50  ;;  %v2805_v37 = vld [vmem:[%s4255_s15 + $0x64] sm:$0xf]  ;;  %v2682_v39 = vor.u32 %v2806_v29, %v2681_v35  ;;  %v2683_v40 = vld [vmem:[%s4255_s15 + $0x68] sm:$0xf0]  ;;  %v2673_v44 = vld [vmem:[%s4255_s15 + $0x50] sm:$0xf] }
 0x3f7   : > { %2121 = vmatpush.bf16.msra.mxu2 %v2690_v33  ;;  %v2686_v42 = vor.u32 %v2805_v37, %v2683_v40  ;;  %v2804_v45 = vld [vmem:[%s4255_s15 + $0x54] sm:$0xf0]  ;;  %v2803_v47 = vld [vmem:[%s4255_s15 + $0x54] sm:$0xf]  ;;  %v2675_v43 = vld [vmem:[%s4255_s15 + $0x58] sm:$0xf0] }
 0x3f8   : > { %2134 = vmatpush.bf16.msra.mxu3 %v2694_v20  ;;  %v2674_v51 = vor.u32 %v2804_v45, %v2673_v44  ;;  %v2665_v34 = vld [vmem:[%s4255_s15 + $0x40] sm:$0xf]  ;;  %v2802_v41 = vld [vmem:[%s4255_s15 + $0x44] sm:$0xf0]  ;;  %v2678_v53 = vor.u32 %v2803_v47, %v2675_v43  ;;  %v2801_v54 = vld [vmem:[%s4255_s15 + $0x44] sm:$0xf]  ;;  %2296 = vmatpush.bf16.msrb.mxu1 %v2824_v5 }
 0x3f9   : > { %v2667_v55 = vld [vmem:[%s4255_s15 + $0x48] sm:$0xf0]  ;;  %v2666_v57 = vor.u32 %v2802_v41, %v2665_v34  ;;  %v2657_v59 = vld [vmem:[%s4255_s15 + $0x30] sm:$0xf]  ;;  %v2800_v30 = vld [vmem:[%s4255_s15 + $0x34] sm:$0xf0] }
 0x3fa   : > { %v2670_v58 = vor.u32 %v2801_v54, %v2667_v55  ;;  %v2799_v38 = vld [vmem:[%s4255_s15 + $0x34] sm:$0xf]  ;;  %v2659_v46 = vld [vmem:[%s4255_s15 + $0x38] sm:$0xf0]  ;;  %v2658_v52 = vor.u32 %v2800_v30, %v2657_v59  ;;  %v2649_v0 = vld [vmem:[%s4255_s15 + $0x20] sm:$0xf] }
 0x3fb   : > { %2122 = vmatpush.bf16.msra.mxu2 %v2682_v39  ;;  %v2662_v63 = vor.u32 %v2799_v38, %v2659_v46  ;;  %v2797_v4 = vld [vmem:[%s4255_s15 + $0x24] sm:$0xf]  ;;  %v2651_v3 = vld [vmem:[%s4255_s15 + $0x28] sm:$0xf0]  ;;  %v2633_v22 = vld [vmem:[%s4255_s15] sm:$0xf] }
 0x3fc   : > { %2135 = vmatpush.bf16.msra.mxu3 %v2686_v42  ;;  %v2794_v23 = vld [vmem:[%s4255_s15 + $0x4] sm:$0xf0]  ;;  %v2793_v24 = vld [vmem:[%s4255_s15 + $0x4] sm:$0xf]  ;;  %v2635_v26 = vld [vmem:[%s4255_s15 + $0x8] sm:$0xf0] }
 0x3fd   : > { %v2813_v27 = vld [vmem:[#allocation8 + $0x20] sm:$0xff]  ;;  %v2634_v1 = vor.u32 %v2794_v23, %v2633_v22  ;;  %v2638_v33 = vor.u32 %v2793_v24, %v2635_v26  ;;  %v2812_v20 = vld [vmem:[#allocation8 + $0x18] sm:$0xff]  ;;  %v2819_v40 = vld [vmem:[#allocation8 + $0x50] sm:$0xff]  ;;  %s678_s10 = scalar_lea.vmem [#allocation10], %s2507_s8 }
 0x3fe   : > { %v2821_v25 = vld [vmem:[#allocation8 + $0x60] sm:$0xff]  ;;  %v2820_v29 = vld [vmem:[#allocation8 + $0x58] sm:$0xff]  ;;  %v2810_v54 = vld [vmem:[#allocation8 + $0x8] sm:$0xff] }
 0x3ff   : > { %2123 = vmatpush.bf16.msra.mxu2 %v2674_v51  ;;  %v3005_v45 = vld [vmem:[%s4256_s17] ss:$0 sm:$0xff]  ;;  %v2809_v55 = vld [vmem:[#allocation8] sm:$0xff]  ;;  %s2761_s17 = sshll.u32 %s2355_s6, 3  ;;  %s2359_s6 = sshll.u32 %s678_s10, 4  ;;  %s2360_s6 = int_to_ptr.vmem [resolvable:$true] %s2359_s6 }
 0x400   : > { %2136 = vmatpush.bf16.msra.mxu3 %v2678_v53  ;;  %v3006_v43 = vld [vmem:[%s4257_s7] ss:$0 sm:$0xff]  ;;  %s4261_s7 = sld [smem:[#allocation36_spill]] }
 0x403   : > { %2124 = vmatpush.bf16.msra.mxu2 %v2666_v57  ;;  %v2035_v57 = vld [vmem:[%s4258_s30] sm:$0x3]  ;;  %s4262_s30 = sld [smem:[#allocation38_spill]] }
 0x404   : > { %2137 = vmatpush.bf16.msra.mxu3 %v2670_v58  ;;  %v2038_v58 = vperm.slane %v2035_v57, 1 }
 0x407   : > { %2125 = vmatpush.bf16.msra.mxu2 %v2658_v52 }
 0x408   : > { %2138 = vmatpush.bf16.msra.mxu3 %v2662_v63 }
 0x409   : > { %s4263_s18 = smov %s4262_s30  ;;  %s2357_s20 = scalar_lea.hbm %s4262_s30, %s2761_s17 }
 0x40a   : > { %s2361_s4 = sshll.u32 %s2357_s20, 4  ;;  %s3173_s3 = scalar_lea.hbm %s4263_s18, 64  ;;  %s2362_s4 = int_to_ptr.hbm [resolvable:$true] %s2361_s4 }
 0x40b   : > { %s3167_s25 = sshra.s32 %s2362_s4, 4  ;;  %s3168_s25 = int_to_ptr.hbm [resolvable:$true] %s3167_s25 }
 0x40c   : > { %p3174_p4 = scmp.lt.s32.totalorder %s3168_s25, %s4263_s18 }
 0x448   : > { %v1916_v14 = vpop.permute.xlu2 %1915 }
 0x45e   : > { %v1912_v8 = vpop.permute.xlu0 %1911 }
 0x462   : > { %v1908_v7 = vpop.permute.xlu1 %1907 }
 0x463   : > { %v1918_v10 = vsel %vm1564_vm1, %v1899_v2, %v1908_v7  ;;  %v2798_v2 = vld [vmem:[%s4255_s15 + $0x24] sm:$0xf0]  ;;  %v2815_v7 = vld [vmem:[#allocation8 + $0x30] sm:$0xff] }
 0x464   : > { %v1920_v11 = vsel %vm1919_vm2, %v1918_v10, %v1912_v8  ;;  %v2650_v8 = vor.u32 %v2798_v2, %v2649_v0  ;;  %v2823_v10 = vld [vmem:[#allocation8 + $0x70] sm:$0xff]  ;;  %2284 = vmatpush.bf16.msrb.mxu0 %v2815_v7  ;;  %v3007_v0 = vld [vmem:[%s4259_s9] ss:$0 sm:$0xff] }
 0x465   : > { %v1922_v12 = vsel %vm1921_vm3, %v1920_v11, %v1916_v14  ;;  %v2654_v11 = vor.u32 %v2797_v4, %v2651_v3  ;;  %2297 = vmatpush.bf16.msrb.mxu1 %v2823_v10 }
 0x466   : > { %v1923_v13 = vpack.c.bf16 %v1922_v12, %v1922_v12  ;;  %v2641_v12 = vld [vmem:[%s4255_s15 + $0x10] sm:$0xf]  ;;  %2126 = vmatpush.bf16.msra.mxu2 %v2650_v8 }
 0x467   : > { %2139 = vmatpush.bf16.msra.mxu3 %v2654_v11 }
 0x468   : > { %2630 = vmatmul.msk.bf16.vlgmr.msra.gmra.mxu1 %vm1960_vm4, %v1923_v13  ;;  %v2796_v13 = vld [vmem:[%s4255_s15 + $0x14] sm:$0xf0] }
 0x4e5   : > { %v1973_v16 = vpop.f32.mrf.mxu1 }
 0x4e6   : > { %v1974_v17 = vadd.f32 %v3004_v15, %v1973_v16  ;;  %v2795_v15 = vld [vmem:[%s4255_s15 + $0x14] sm:$0xf]  ;;  %v2643_v16 = vld [vmem:[%s4255_s15 + $0x18] sm:$0xf0] }
 0x4e8   : > { %v3998_v9 = vadd.f32 %v3032_v18, %v1974_v17  ;;  %v2814_v17 = vld [vmem:[#allocation8 + $0x28] sm:$0xff]  ;;  %v2642_v18 = vor.u32 %v2796_v13, %v2641_v12 }
 0x4e9   : > { %2285 = vmatpush.bf16.msrb.mxu0 %v2814_v17 }
 0x4ea   : > { %1980 = vadd.xlane.f32.xlu0 %v3998_v9  ;;  %v1990_v19 = vmul.f32 %v3998_v9, %v3998_v9  ;;  %2127 = vmatpush.bf16.msra.mxu2 %v2642_v18 }
 0x4ec   : > { %1991 = vadd.xlane.f32.xlu1 %v1990_v19  ;;  %v2822_v19 = vld [vmem:[#allocation8 + $0x68] sm:$0xff] }
 0x4ed   : > { %v1975_v21 = vpop.f32.mrf.mxu1  ;;  %2298 = vmatpush.bf16.msrb.mxu1 %v2822_v19  ;;  %2286 = vmatpush.bf16.msrb.mxu0 %v2813_v27 }
 0x4ee   : > { %v2646_v21 = vor.u32 %v2795_v15, %v2643_v16  ;;  %2128 = vmatpush.bf16.msra.mxu2 %v2634_v1 }
 0x4f0   : > { %2140 = vmatpush.bf16.msra.mxu3 %v2646_v21 }
 0x4f1   : > { %2299 = vmatpush.bf16.msrb.mxu1 %v2821_v25  ;;  %2287 = vmatpush.bf16.msrb.mxu0 %v2812_v20  ;;  %v3009_v25 = vld [vmem:[%s4265_s23] ss:$0 sm:$0xff] }
 0x4f4   : > { %2141 = vmatpush.bf16.msra.mxu3 %v2638_v33 }
 0x4f5   : > { %2300 = vmatpush.bf16.msrb.mxu1 %v2820_v29  ;;  %2288 = vmatpush.bf16.msrb.mxu0 %v2811_v28 }
 0x4f9   : > { %2301 = vmatpush.bf16.msrb.mxu1 %v2819_v40  ;;  %2289 = vmatpush.bf16.msrb.mxu0 %v2810_v54 }
 0x4fd   : > { %2290 = vmatpush.bf16.msrb.mxu0 %v2809_v55 }
 0x55d   : > { %v1981_v56 = vpop.xlane.xlu0 %1980 }
 0x55e   : > { %v4054_v61 = vmul.f32 %v4036_v48, %v1981_v56  ;;  %v2817_v56 = vld [vmem:[#allocation8 + $0x40] sm:$0xff] }
 0x55f   : > { %v1992_v60 = vpop.xlane.xlu1 %1991 }
 0x560   : > { %v1994_v36 = vmul.f32 %v4054_v61, %v4054_v61  ;;  %v1993_v32 = vmul.f32 %v1992_v60, %v4036_v48  ;;  %v1997_v44 = vsub.f32 %v3998_v9, %v4054_v61  ;;  %v2818_v9 = vld [vmem:[#allocation8 + $0x48] sm:$0xff]  ;;  %v2037_v61 = vperm.slane %v2035_v57, 0 }
 0x561   : > { %2302 = vmatpush.bf16.msrb.mxu1 %v2818_v9 }
 0x562   : > { %v1995_v62 = vsub.f32 %v1993_v32, %v1994_v36 }
 0x564   : > { %v1996_v6 = vmax.f32 %v1995_v62, 0.0 }
 0x565   : > { %2303 = vmatpush.bf16.msrb.mxu1 %v2817_v56 }
 0x566   : > { %v1998_v14 = vadd.f32 1e-05, %v1996_v6 }
 0x568   : > { %3028 = vrsqrt.f32 %v1998_v14  ;;  %vm2005_vm7 = vweird.f32 %v1998_v14 }
 0x56e   : > { %v3029_v31 = vpop.eup %3028 }
 0x56f   : > { %v2000_v50 = vmul.f32 %v3029_v31, %v1998_v14  ;;  %vm2006_vm6 = vweird.f32 %v3029_v31 }
 0x570   : > { %vm2007_vm8 = vmor %vm2005_vm7, %vm2006_vm6 }
 0x571   : > { %v2001_v35 = vmul.f32 %v3029_v31, %v2000_v50 }
 0x573   : > { %v2002_v37 = vmul.f32 0.5, %v2001_v35 }
 0x575   : > { %v2003_v39 = vsub.f32 1.5, %v2002_v37 }
 0x577   : > { %v2004_v42 = vmul.f32 %v3029_v31, %v2003_v39 }
 0x579   : > { %v2008_v47 = vsel %vm2007_vm8, %v3029_v31, %v2004_v42 }
 0x57a   : > { %v2009_v51 = vmul.f32 %v2008_v47, %v1997_v44 }
 0x57c   : > { %v2013_v34 = vmul.f32 %v3005_v45, %v2009_v51 }
 0x57e   : > { %v2017_v41 = vadd.f32 %v3006_v43, %v2013_v34 }
 0x580   : > { %v2018_v53 = vpack.c.bf16 %v2017_v41, %v2017_v41 }
 0x582   : > { %2129 = vmatmul.bf16.vlgmr.msra.gmra.mxu2 %v2018_v53  ;;  %2142 = vmatmul.bf16.vlgmr.msra.gmra.mxu3 %v2018_v53 }
 0x605   : > { %v2130_v59 = vpop.f32.mrf.mxu2  ;;  %v2143_v30 = vpop.f32.mrf.mxu3 }
 0x606   : > { %v2131_v60 = vadd.f32 %v2130_v59, %v2037_v61  ;;  %v2144_v38 = vadd.f32 %v2143_v30, %v2038_v58 }
 0x608   : > { %v2147_v46 = vmax.f32 %v2131_v60, 0.0  ;;  %v2148_v36 = vmax.f32 %v2144_v38, 0.0 }
 0x60a   : > { %v2149_v32 = vpack.c.bf16 %v2147_v46, %v2147_v46  ;;  %v2150_v52 = vpack.c.bf16 %v2148_v36, %v2148_v36 }
 0x60c   : > { %2291 = vmatmul.bf16.vlgmr.msrb.gmra.mxu0 %v2149_v32  ;;  %2304 = vmatmul.bf16.vlgmr.msrb.gmra.mxu1 %v2150_v52 }
 0x60d   : > { %v2132_v62 = vpop.f32.mrf.mxu2  ;;  %v2145_v63 = vpop.f32.mrf.mxu3 }
 0x689   : > { %v2292_v2 = vpop.f32.mrf.mxu0  ;;  %v2305_v49 = vpop.f32.mrf.mxu1 }
 0x68a   : > { %v2293_v4 = vadd.f32 %v3007_v0, %v2292_v2 }
 0x68c   : > { %v2306_v3 = vadd.f32 %v2305_v49, %v2293_v4 }
 0x68e   : > { %v2309_v5 = vadd.f32 %v2306_v3, %v2017_v41 }
 0x690   : > { %2312 = vadd.xlane.f32.xlu2 %v2309_v5  ;;  %v2315_v6 = vmul.f32 %v2309_v5, %v2309_v5 }
 0x691   : > { %v2294_v7 = vpop.f32.mrf.mxu0  ;;  %v2307_v8 = vpop.f32.mrf.mxu1 }
 0x692   : > { %2316 = vadd.xlane.f32.xlu0 %v2315_v6 }
 0x703   : > { %v2313_v10 = vpop.xlane.xlu2 %2312 }
 0x704   : > { %v2314_v14 = vmul.f32 %v2313_v10, %v4036_v48 }
 0x705   : > { %v2317_v11 = vpop.xlane.xlu0 %2316 }
 0x706   : > { %v2319_v12 = vmul.f32 %v2314_v14, %v2314_v14  ;;  %v2318_v13 = vmul.f32 %v2317_v11, %v4036_v48  ;;  %v2322_v26 = vsub.f32 %v2309_v5, %v2314_v14  ;;  %v3008_v48 = vld [vmem:[%s4261_s7] ss:$0 sm:$0xff]  ;;  %s3169_s7 = scalar_lea.hbm %s3168_s25, 8 }
 0x707   : > { %p3170_p11 = scmp.ne.s32.totalorder %s3168_s25, %s3169_s7  ;;  %p3175_p5 = scmp.lt.s32.totalorder %s3173_s3, %s3169_s7 }
 0x708   : > { %v2320_v15 = vsub.f32 %v2318_v13, %v2319_v12 }
 0x709   : > { %p3171_p0 = pnand %p3170_p11, %p3467_p7  ;;  %p3176_p6 = por %p3175_p5, %p3174_p4 }
 0x70a   : > { %v2321_v16 = vmax.f32 %v2320_v15, 0.0 }
 0x70b   : > { %p3172_p2 = pneg %p3171_p0 }
 0x70c   : > { %v2323_v17 = vadd.f32 1e-05, %v2321_v16 }
 0x70d   : > { %p3177_p8 = pnand %p3176_p6, %p3172_p2 }
 0x70e   : > { %3030 = vrsqrt.f32 %v2323_v17  ;;  %vm2330_vm10 = vweird.f32 %v2323_v17 }
 0x714   : > { %v3031_v18 = vpop.eup %3030 }
 0x715   : > { %v2325_v19 = vmul.f32 %v3031_v18, %v2323_v17  ;;  %vm2331_vm9 = vweird.f32 %v3031_v18 }
 0x716   : > { %vm2332_vm11 = vmor %vm2330_vm10, %vm2331_vm9 }
 0x717   : > { %v2326_v21 = vmul.f32 %v3031_v18, %v2325_v19 }
 0x719   : > { %v2327_v22 = vmul.f32 0.5, %v2326_v21 }
 0x71b   : > { %v2328_v23 = vsub.f32 1.5, %v2327_v22 }
 0x71d   : > { %v2329_v24 = vmul.f32 %v3031_v18, %v2328_v23 }
 0x71f   : > { %v2333_v27 = vsel %vm2332_vm11, %v3031_v18, %v2329_v24 }
 0x720   : > { %v2334_v1 = vmul.f32 %v2333_v27, %v2322_v26 }
 0x722   : > { %v2338_v31 = vmul.f32 %v3008_v48, %v2334_v1 }
 0x724   : > { %v2342_v33 = vadd.f32 %v3009_v25, %v2338_v31 }
 0x726   : > { %2343 = vst [vmem:[%s678_s10] sm:$0xff] %v2342_v33 }
 0x727   : > { %3180 = shalt.err (!%p3177_p8)
}
 0x728   : > { %2839 = dma.vmem_to_hbm [thread:$0]  (%p3467_p7), %s2360_s6, 128, %s2362_s4, %s2345_s24  }
 0x729 PF: > { %s4266_s21 = sld [smem:[#allocation15_spill]]  ;;  %p2866_p10 = scmp.ge.s32.totalorder %s3283_s2, 2 }
 0x72b   : > { %p2856_p12 = pnand %p2866_p10, %p3472_p9 }
 0x72d   : > { %p2857_p13 = pneg %p2856_p12 }
 0x72f   : > { %s2373_s1 = sand.u32 1, %s4266_s21  }
 0x730   : > { %s2374_s9 = scalar_lea.sflag [#allocation4], %s2373_s1 }
 0x731   : > { %3238 = dma.done.wait (%p2857_p13), %s2374_s9, 128  }
 0x732   : > { %3240 = vsyncadd (%p2857_p13), %s2374_s9, 4294967168  ;;  %s36_s2 = sadd.s32 1, %s3283_s2   ;;  %s4268_s27 = sld [smem:[#allocation16_spill]] }
 0x733   : > { %p33_p1 = scmp.ge.s32.totalorder %s36_s2, 10   ;;  %s4269_s23 = smov %s3532_s28 }
 0x734   : > { %s4270_s1 = sld [smem:[#allocation17_spill]]  ;;  %s4272_s28 = smov %s3251_s29 }
 0x735   : > { %s4271_s21 = sld [smem:[#allocation20_spill]]  ;;  %s4273_s29 = smov %s4269_s23 }
 0x736   : > { %s4274_s30 = smov %s3259_s0  ;;  %s4275_s0 = smov %s3263_s19 }
 0x737   : > { %s4276_s19 = smov %s3527_s26  ;;  %s4277_s20 = smov %s3279_s22 }
 0x738   : > { %s4278_s22 = smov %s4284_s13  ;;  %35 = sbr.rel (!%p33_p1) target bundleno = 30 (0x1e), region = 152 }
 0x73d   :  { %2380 = vsyncpa [#allocation3], 1 }
 0x73e   :  { %2382 = vsyncpa [#allocation3 + $0x1], 1 }
 0x73f   :  { %2383 = vsyncpa [#allocation6], 1 }
 0x740   :  { %2384 = vsyncpa [#allocation9], 1 }
 0x741   :  { %2385 = vsyncpa [#allocation4], 1 }
 0x742   :  { %2387 = vsyncpa [#allocation4 + $0x1], 1 }

</bundles_post_ra>
